<compile_context>
chip_gen: v5e
topology: v5e:2x2
jax: 0.10.0
libtpu: 0.0.40
codegen_flags: <defaults>
</compile_context>

<pallas_src>
import functools

import numpy as np
import jax
import jax.numpy as jnp
from jax.experimental import pallas as pl
from jax.experimental.pallas import tpu as pltpu

C_KERNEL = 3
C_STRIDE = 2
P_KERNEL = 2
P_STRIDE = 2
USE_POOL = True
LATENT_DIM = 32
BN_EPS = 1e-5


# ----------------------------- fused Pallas kernel -------------------------------
def _make_decoder_kernel(ops):
    """Build the fused kernel body for an op sequence.

    ops: tuple of layer descriptors, consumed in order with their operands:
      ("dense",)                 -> w (Din,Dout) f32, b_row (1,Dout) f32
      ("conv", relu, inv_count)  -> weff (F_in,F_out) bf16, bias_row (1,F_out) f32,
                                    msum (F_out,C) bf16 0/1, mexp (C,F_out) bf16 0/1,
                                    gamma_row (1,F_out) f32, beta_row (1,F_out) f32
      ("unpool",)                -> idx_f (N,F_in) f32 (global flat output index),
                                    G (F_in,F_out) bf16 0/1 gather matrix
    Activations live as (N, C*H*W) slabs (channel-major flatten of NCHW).
    """

    def kernel(*refs):
        *in_refs, o_ref = refs
        it = iter(in_refs)
        x = next(it)[...]  # (N, latent) f32

        for op in ops:
            kind = op[0]
            if kind == "dense":
                w = next(it)[...]
                b = next(it)[...]
                x = jnp.dot(x, w, preferred_element_type=jnp.float32) + b
                x = jnp.maximum(x, 0.0)  # dense_activ = relu; dropout = Identity

            elif kind == "conv":
                _, relu, inv_count = op
                w = next(it)[...]                          # (F_in, F_out) bf16 (scatter-folded)
                brow = next(it)[...]                       # (1, F_out)
                msum = next(it)[...].astype(jnp.float32)   # (F_out, C) 0/1 block-sum
                mexp = next(it)[...].astype(jnp.float32)   # (C, F_out) 0/1 block-expand
                grow = next(it)[...]                       # (1, F_out)
                btrow = next(it)[...]                      # (1, F_out)
                z = jnp.dot(x.astype(w.dtype), w,
                            preferred_element_type=jnp.float32) + brow
                # training-mode BatchNorm2d (biased var), one-pass stats; s1/s2 stacked so the
                # per-channel reduce/expand is a single chained (2,F)@(F,C)@(C,F) matmul pair.
                s12 = jnp.concatenate(
                    [jnp.sum(z, axis=0, keepdims=True),
                     jnp.sum(z * z, axis=0, keepdims=True)], axis=0)      # (2, F_out)
                stats = jnp.dot(
                    jnp.dot(s12, msum, preferred_element_type=jnp.float32),
                    mexp, preferred_element_type=jnp.float32) * inv_count  # (2, F_out)
                mean = stats[0:1, :]
                var = jnp.maximum(stats[1:2, :] - mean * mean, 0.0)        # clamp cancellation
                x = (z - mean) * (jax.lax.rsqrt(var + BN_EPS) * grow) + btrow
                if relu:  # c_activ = relu; dropout2d = Identity (skipped on final layer)
                    x = jnp.maximum(x, 0.0)

            elif kind == "unpool":
                # Output-side gather: each output lane has exactly one candidate pool window
                # (non-overlapping windows); keep its value iff the stored max-index matches.
                idx_f = next(it)[...]                     # (N, F_in) f32, global output index
                g = next(it)[...].astype(jnp.float32)     # (F_in, F_out) 0/1 gather
                x_g = jnp.dot(x, g, preferred_element_type=jnp.float32)
                idx_o = jnp.dot(idx_f, g, preferred_element_type=jnp.float32)
                lane = jax.lax.broadcasted_iota(jnp.int32, x_g.shape, 1).astype(jnp.float32)
                x = jnp.where(idx_o == lane, x_g, 0.0)

        o_ref[...] = x

    return kernel


# ----------------------------- init-time constant builders -----------------------
@functools.lru_cache(maxsize=None)
def _scatter_matrix(hi, wi, k, s, ho, wo):
    """M[kh,kw,ih,iw,oh,ow] = 1 iff oh == ih*s + kh and ow == iw*s + kw (output_padding -> 0)."""
    m = np.zeros((k, k, hi, wi, ho, wo), np.float32)
    for kh in range(k):
        for kw in range(k):
            for ih in range(hi):
                for iw in range(wi):
                    oh, ow = ih * s + kh, iw * s + kw
                    if oh < ho and ow < wo:
                        m[kh, kw, ih, iw, oh, ow] = 1.0
    return m


@functools.lru_cache(maxsize=None)
def _channel_matrices(co, sp):
    """Block-sum (co*sp, co) and block-expand (co, co*sp) 0/1 matrices (unscaled)."""
    msum = (np.arange(co * sp)[:, None] // sp == np.arange(co)[None, :]).astype(np.float32)
    return msum, np.ascontiguousarray(msum.T)


@functools.lru_cache(maxsize=None)
def _unpool_gather_matrix(ci, hi, wi, ho, wo, k, s):
    """G[i, o] = 1 iff output lane o's (only) covering pool window is input lane i."""
    g = np.zeros((ci * hi * wi, ci * ho * wo), np.float32)
    for c in range(ci):
        for oh in range(ho):
            ih = oh // s
            if ih >= hi or oh >= ih * s + k:
                continue
            for ow in range(wo):
                iw = ow // s
                if iw >= wi or ow >= iw * s + k:
                    continue
                g[(c * hi + ih) * wi + iw, (c * ho + oh) * wo + ow] = 1.0
    return g


@functools.lru_cache(maxsize=None)
def _chan_offsets(ci, hi, wi, sp_out):
    return ((np.arange(ci * hi * wi) // (hi * wi)) * sp_out).astype(np.float32)


# ----------------------------- cached, jitted forward builder --------------------
@functools.lru_cache(maxsize=None)
def _build_decoder_fn(shapes_key, n):
    """Build a jitted forward for a given (shapes, batch) signature."""
    ops = []
    plan = []
    cur = None  # current (C, H, W)
    c_idx, p_idx = -1, -1

    for i in range(len(shapes_key) - 1, -1, -1):
        name, shape = shapes_key[i]
        if name == "conv":
            ci, hi, wi = cur
            co, ho, wo = int(shape[1]), int(shape[2]), int(shape[3])
            sp = ho * wo
            m = _scatter_matrix(hi, wi, C_KERNEL, C_STRIDE, ho, wo)
            msum, mexp = _channel_matrices(co, sp)
            plan.append(("conv", c_idx, (ci, hi, wi), (co, ho, wo), m, msum, mexp))
            ops.append(("conv", i != 0, 1.0 / float(n * sp)))
            c_idx -= 1
            cur = (co, ho, wo)
        elif USE_POOL and name == "pool":
            ci, hi, wi = cur
            ho, wo = int(shape[2]), int(shape[3])
            g = _unpool_gather_matrix(ci, hi, wi, ho, wo, P_KERNEL, P_STRIDE)
            off = _chan_offsets(ci, hi, wi, ho * wo)
            plan.append(("unpool", p_idx, ci * hi * wi, off, g))
            ops.append(("unpool",))
            p_idx -= 1
            cur = (ci, ho, wo)
        elif name == "flatten":
            cur = tuple(int(d) for d in shape[1:])
        elif name == "dense":
            plan.append(("dense",))
            ops.append(("dense",))
            cur = (int(shape[-1]), 1, 1)

    out_chw = cur
    out_f = int(np.prod(out_chw))
    kernel = _make_decoder_kernel(tuple(ops))

    def fwd(x, pool_indices, params):
        operands = [x.astype(jnp.float32)]
        for entry in plan:
            kind = entry[0]
            if kind == "dense":
                operands += [params["dense_w"].astype(jnp.float32),
                             params["dense_b"].reshape(1, -1).astype(jnp.float32)]
            elif kind == "conv":
                _, ci_, (ci, hi, wi), (co, ho, wo), m, msum, mexp = entry
                sp = ho * wo
                w = params["tconv_w"][ci_]
                b = params["tconv_b"][ci_]
                ga = params["bn_gamma"][ci_]
                bt = params["bn_beta"][ci_]
                # Weff[(ci,ih,iw),(co,oh,ow)] = sum_{kh,kw} w[ci,co,kh,kw] * M[kh,kw,ih,iw,oh,ow]
                weff = jnp.einsum("iokl,klxyuv->ixyouv", w, jnp.asarray(m)
                                  ).reshape(ci * hi * wi, co * sp)
                operands += [
                    weff.astype(jnp.bfloat16),
                    jnp.repeat(b, sp)[None, :].astype(jnp.float32),
                    jnp.asarray(msum, jnp.bfloat16),   # 0/1 -> exact in bf16
                    jnp.asarray(mexp, jnp.bfloat16),
                    jnp.repeat(ga, sp)[None, :].astype(jnp.float32),
                    jnp.repeat(bt, sp)[None, :].astype(jnp.float32),
                ]
            elif kind == "unpool":
                _, pi_, f_in, off, g = entry
                idx = pool_indices[pi_]
                idx_f = (idx.reshape(n, f_in).astype(jnp.float32)
                         + jnp.asarray(off)[None, :])
                operands += [idx_f, jnp.asarray(g, jnp.bfloat16)]

        out = pl.pallas_call(
            kernel,
            out_shape=jax.ShapeDtypeStruct((n, out_f), jnp.float32),
            in_specs=[pl.BlockSpec(memory_space=pltpu.MemorySpace.VMEM) for _ in operands],
            out_specs=pl.BlockSpec(memory_space=pltpu.MemorySpace.VMEM),
        )(*operands)
        return out.reshape((n,) + out_chw)

    return jax.jit(fwd), out_chw


def pallas_decoder_forward(x, pool_indices, shapes, params):
    n = int(x.shape[0])
    shapes_key = tuple((name, tuple(int(d) for d in shape)) for name, shape in shapes)
    fwd, _ = _build_decoder_fn(shapes_key, n)
    return fwd(x, tuple(pool_indices), params)


# ----------------------------- pure numpy reference ------------------------------
def _ref_conv_transpose(x, w, b, s, out_hw):
    n, ci, hi, wi = x.shape
    _, co, k, _ = w.shape
    ho, wo = out_hw
    out = np.zeros((n, co, ho, wo), np.float64)
    for kh in range(k):
        for kw in range(k):
            contrib = np.einsum("ncij,cd->ndij", x, w[:, :, kh, kw])
            out[:, :, kh:kh + s * hi:s, kw:kw + s * wi:s] += contrib
    return out + b.reshape(1, co, 1, 1)


def _ref_bn(x, gamma, beta, *, relu):
    mean = x.mean(axis=(0, 2, 3), keepdims=True)
    var = x.var(axis=(0, 2, 3), keepdims=True)  # biased (training mode)
    y = (x - mean) / np.sqrt(var + BN_EPS) * gamma.reshape(1, -1, 1, 1) + beta.reshape(1, -1, 1, 1)
    return np.maximum(y, 0.0) if relu else y


def _ref_unpool(x, idx, out_hw):
    n, c, hi, wi = x.shape
    ho, wo = out_hw
    out = np.zeros((n, c, ho * wo), np.float64)
    xf = x.reshape(n, c, hi * wi)
    idxf = idx.reshape(n, c, hi * wi)
    for nn in range(n):
        for cc in range(c):
            out[nn, cc, idxf[nn, cc]] = xf[nn, cc]
    return out.reshape(n, c, ho, wo)


def ref_decoder_forward(x, pool_indices, shapes, params):
    x = np.asarray(x, np.float64)
    c, p = -1, -1
    for i in range(len(shapes) - 1, -1, -1):
        name, shape = shapes[i]
        if name == "conv":
            w = np.asarray(params["tconv_w"][c], np.float64)
            b = np.asarray(params["tconv_b"][c], np.float64)
            g = np.asarray(params["bn_gamma"][c], np.float64)
            bt = np.asarray(params["bn_beta"][c], np.float64)
            x = _ref_conv_transpose(x, w, b, C_STRIDE, (shape[2], shape[3]))
            x = _ref_bn(x, g, bt, relu=(i != 0))
            if i == 0:
                return x
            c -= 1
        elif USE_POOL and name == "pool":
            x = _ref_unpool(x, np.asarray(pool_indices[p]), (shape[2], shape[3]))
            p -= 1
        elif name == "flatten":
            x = x.reshape((-1,) + tuple(shape[1:]))
        elif name == "dense":
            w = np.asarray(params["dense_w"], np.float64)
            b = np.asarray(params["dense_b"], np.float64)
            x = np.maximum(x @ w + b, 0.0)
    return x


# ------------------------------------ main ---------------------------------------
if __name__ == "__main__":
    key = jax.random.PRNGKey(0)
    ks = jax.random.split(key, 16)
    N = 2

    # Shape trace produced by the mirrored encoder:
    #   (N,3,16,16) -conv-> (N,8,7,7) -pool-> (N,8,3,3) -conv-> (N,4,1,1) -flatten-> (N,4) -dense-> (N,32)
    shapes = [
        ("conv", (N, 3, 16, 16)),
        ("pool", (N, 8, 7, 7)),
        ("conv", (N, 8, 3, 3)),
        ("flatten", (N, 4, 1, 1)),
        ("dense", (N, 4)),
    ]

    # channels = [3, 8]: tconvs[0]: 8->3, tconvs[1]: 4->8 ; weight layout (Cin, Cout, K, K)
    params = {
        "dense_w": (jax.random.normal(ks[0], (LATENT_DIM, 4)) * 0.2).astype(jnp.float32),
        "dense_b": (jax.random.normal(ks[1], (4,)) * 0.1).astype(jnp.float32),
        "tconv_w": [
            (jax.random.normal(ks[2], (8, 3, C_KERNEL, C_KERNEL)) * 0.15).astype(jnp.float32),
            (jax.random.normal(ks[3], (4, 8, C_KERNEL, C_KERNEL)) * 0.15).astype(jnp.float32),
        ],
        "tconv_b": [
            (jax.random.normal(ks[4], (3,)) * 0.1).astype(jnp.float32),
            (jax.random.normal(ks[5], (8,)) * 0.1).astype(jnp.float32),
        ],
        "bn_gamma": [
            (1.0 + 0.1 * jax.random.normal(ks[6], (3,))).astype(jnp.float32),
            (1.0 + 0.1 * jax.random.normal(ks[7], (8,))).astype(jnp.float32),
        ],
        "bn_beta": [
            (0.1 * jax.random.normal(ks[8], (3,))).astype(jnp.float32),
            (0.1 * jax.random.normal(ks[9], (8,))).astype(jnp.float32),
        ],
    }

    # Fabricated (deterministic) MaxPool2d(k=2,s=2) indices: one flat position per
    # non-overlapping 2x2 window of the 7x7 plane -> values in [0, 49), unique per plane.
    di = jax.random.bernoulli(ks[10], 0.5, (N, 8, 3, 3)).astype(jnp.int32)
    dj = jax.random.bernoulli(ks[11], 0.5, (N, 8, 3, 3)).astype(jnp.int32)
    ii = jnp.arange(3, dtype=jnp.int32).reshape(1, 1, 3, 1)
    jj = jnp.arange(3, dtype=jnp.int32).reshape(1, 1, 1, 3)
    pool_idx = ((P_STRIDE * ii + di) * 7 + (P_STRIDE * jj + dj)).astype(jnp.int32)
    pool_indices = [pool_idx]

    x = jax.random.normal(ks[12], (N, LATENT_DIM), dtype=jnp.float32)

    out = pallas_decoder_forward(x, pool_indices, shapes, params)
    out = jax.block_until_ready(out)
    assert out.shape == (N, 3, 16, 16), out.shape

    ref = ref_decoder_forward(
        np.asarray(x), [np.asarray(pool_idx)], shapes,
        jax.tree_util.tree_map(np.asarray, params),
    )
    np.testing.assert_allclose(np.asarray(out), ref, rtol=3e-2, atol=3e-2)
    print("KERNEL_OK")
</pallas_src>

<mosaic_0001>
module attributes {stable_mosaic.version = 11 : i64} {
  func.func @kernel(%arg0: memref<2x32xf32, #tpu.memory_space<vmem>>, %arg1: memref<32x4xf32, #tpu.memory_space<vmem>>, %arg2: memref<1x4xf32, #tpu.memory_space<vmem>>, %arg3: memref<4x72xbf16, #tpu.memory_space<vmem>>, %arg4: memref<1x72xf32, #tpu.memory_space<vmem>>, %arg5: memref<72x8xbf16, #tpu.memory_space<vmem>>, %arg6: memref<8x72xbf16, #tpu.memory_space<vmem>>, %arg7: memref<1x72xf32, #tpu.memory_space<vmem>>, %arg8: memref<1x72xf32, #tpu.memory_space<vmem>>, %arg9: memref<2x72xf32, #tpu.memory_space<vmem>>, %arg10: memref<72x392xbf16, #tpu.memory_space<vmem>>, %arg11: memref<392x768xbf16, #tpu.memory_space<vmem>>, %arg12: memref<1x768xf32, #tpu.memory_space<vmem>>, %arg13: memref<768x3xbf16, #tpu.memory_space<vmem>>, %arg14: memref<3x768xbf16, #tpu.memory_space<vmem>>, %arg15: memref<1x768xf32, #tpu.memory_space<vmem>>, %arg16: memref<1x768xf32, #tpu.memory_space<vmem>>, %arg17: memref<2x768xf32, #tpu.memory_space<vmem>>) attributes {dimension_semantics = [], scalar_prefetch = 0 : i64, scratch_operands = 0 : i64, tpu.core_type = #tpu.core_type<tc>} {
    %c0 = arith.constant 0 : index
    %c0_0 = arith.constant 0 : index
    %0 = vector.load %arg0[%c0, %c0_0] : memref<2x32xf32, #tpu.memory_space<vmem>>, vector<2x32xf32>
    %c0_1 = arith.constant 0 : index
    %c0_2 = arith.constant 0 : index
    %1 = vector.load %arg1[%c0_1, %c0_2] : memref<32x4xf32, #tpu.memory_space<vmem>>, vector<32x4xf32>
    %c0_3 = arith.constant 0 : index
    %c0_4 = arith.constant 0 : index
    %2 = vector.load %arg2[%c0_3, %c0_4] : memref<1x4xf32, #tpu.memory_space<vmem>>, vector<1x4xf32>
    %cst = arith.constant dense<0.000000e+00> : vector<2x4xf32>
    %3 = tpu.matmul %0, %1, %cst {dimension_numbers = #tpu.dot_dimension_numbers<[1], [0], [0], [1], [0, 0, 1, 1], [], []>} : vector<2x32xf32>, vector<32x4xf32>, vector<2x4xf32> -> vector<2x4xf32>
    %4 = vector.broadcast %2 : vector<1x4xf32> to vector<2x4xf32>
    %5 = arith.addf %3, %4 : vector<2x4xf32>
    %cst_5 = arith.constant 0.000000e+00 : f32
    %6 = vector.broadcast %cst_5 : f32 to vector<2x4xf32>
    %7 = arith.maximumf %5, %6 : vector<2x4xf32>
    %c0_6 = arith.constant 0 : index
    %c0_7 = arith.constant 0 : index
    %8 = vector.load %arg3[%c0_6, %c0_7] : memref<4x72xbf16, #tpu.memory_space<vmem>>, vector<4x72xbf16>
    %c0_8 = arith.constant 0 : index
    %c0_9 = arith.constant 0 : index
    %9 = vector.load %arg4[%c0_8, %c0_9] : memref<1x72xf32, #tpu.memory_space<vmem>>, vector<1x72xf32>
    %c0_10 = arith.constant 0 : index
    %c0_11 = arith.constant 0 : index
    %10 = vector.load %arg5[%c0_10, %c0_11] : memref<72x8xbf16, #tpu.memory_space<vmem>>, vector<72x8xbf16>
    %11 = arith.extf %10 : vector<72x8xbf16> to vector<72x8xf32>
    %c0_12 = arith.constant 0 : index
    %c0_13 = arith.constant 0 : index
    %12 = vector.load %arg6[%c0_12, %c0_13] : memref<8x72xbf16, #tpu.memory_space<vmem>>, vector<8x72xbf16>
    %13 = arith.extf %12 : vector<8x72xbf16> to vector<8x72xf32>
    %c0_14 = arith.constant 0 : index
    %c0_15 = arith.constant 0 : index
    %14 = vector.load %arg7[%c0_14, %c0_15] : memref<1x72xf32, #tpu.memory_space<vmem>>, vector<1x72xf32>
    %c0_16 = arith.constant 0 : index
    %c0_17 = arith.constant 0 : index
    %15 = vector.load %arg8[%c0_16, %c0_17] : memref<1x72xf32, #tpu.memory_space<vmem>>, vector<1x72xf32>
    %16 = arith.truncf %7 : vector<2x4xf32> to vector<2x4xbf16>
    %cst_18 = arith.constant dense<0.000000e+00> : vector<2x72xf32>
    %17 = tpu.matmul %16, %8, %cst_18 {dimension_numbers = #tpu.dot_dimension_numbers<[1], [0], [0], [1], [0, 0, 1, 1], [], []>} : vector<2x4xbf16>, vector<4x72xbf16>, vector<2x72xf32> -> vector<2x72xf32>
    %18 = vector.broadcast %9 : vector<1x72xf32> to vector<2x72xf32>
    %19 = arith.addf %17, %18 : vector<2x72xf32>
    %cst_19 = arith.constant dense<0.000000e+00> : vector<72xf32>
    %20 = vector.multi_reduction <add>, %19, %cst_19 [0] : vector<2x72xf32> to vector<72xf32>
    %21 = vector.shape_cast %20 : vector<72xf32> to vector<1x72xf32>
    %22 = arith.mulf %19, %19 : vector<2x72xf32>
    %cst_20 = arith.constant dense<0.000000e+00> : vector<72xf32>
    %23 = vector.multi_reduction <add>, %22, %cst_20 [0] : vector<2x72xf32> to vector<72xf32>
    %24 = vector.shape_cast %23 : vector<72xf32> to vector<1x72xf32>
    %25 = tpu.concatenate %21, %24 in 0 : vector<1x72xf32>, vector<1x72xf32> -> vector<2x72xf32>
    %cst_21 = arith.constant dense<0.000000e+00> : vector<2x8xf32>
    %26 = tpu.matmul %25, %11, %cst_21 {dimension_numbers = #tpu.dot_dimension_numbers<[1], [0], [0], [1], [0, 0, 1, 1], [], []>} : vector<2x72xf32>, vector<72x8xf32>, vector<2x8xf32> -> vector<2x8xf32>
    %cst_22 = arith.constant dense<0.000000e+00> : vector<2x72xf32>
    %27 = tpu.matmul %26, %13, %cst_22 {dimension_numbers = #tpu.dot_dimension_numbers<[1], [0], [0], [1], [0, 0, 1, 1], [], []>} : vector<2x8xf32>, vector<8x72xf32>, vector<2x72xf32> -> vector<2x72xf32>
    %cst_23 = arith.constant 0.055555556 : f32
    %28 = vector.broadcast %cst_23 : f32 to vector<2x72xf32>
    %29 = arith.mulf %27, %28 : vector<2x72xf32>
    %30 = vector.extract_strided_slice %29 {offsets = [0, 0], sizes = [1, 72], strides = [1, 1]} : vector<2x72xf32> to vector<1x72xf32>
    %31 = vector.extract_strided_slice %29 {offsets = [1, 0], sizes = [1, 72], strides = [1, 1]} : vector<2x72xf32> to vector<1x72xf32>
    %32 = arith.mulf %30, %30 : vector<1x72xf32>
    %33 = arith.subf %31, %32 : vector<1x72xf32>
    %cst_24 = arith.constant 0.000000e+00 : f32
    %34 = vector.broadcast %cst_24 : f32 to vector<1x72xf32>
    %35 = arith.maximumf %33, %34 : vector<1x72xf32>
    %36 = vector.broadcast %30 : vector<1x72xf32> to vector<2x72xf32>
    %37 = arith.subf %19, %36 : vector<2x72xf32>
    %cst_25 = arith.constant 9.99999974E-6 : f32
    %38 = vector.broadcast %cst_25 : f32 to vector<1x72xf32>
    %39 = arith.addf %35, %38 : vector<1x72xf32>
    %40 = math.rsqrt %39 : vector<1x72xf32>
    %41 = arith.mulf %40, %14 : vector<1x72xf32>
    %42 = vector.broadcast %41 : vector<1x72xf32> to vector<2x72xf32>
    %43 = arith.mulf %37, %42 : vector<2x72xf32>
    %44 = vector.broadcast %15 : vector<1x72xf32> to vector<2x72xf32>
    %45 = arith.addf %43, %44 : vector<2x72xf32>
    %cst_26 = arith.constant 0.000000e+00 : f32
    %46 = vector.broadcast %cst_26 : f32 to vector<2x72xf32>
    %47 = arith.maximumf %45, %46 : vector<2x72xf32>
    %c0_27 = arith.constant 0 : index
    %c0_28 = arith.constant 0 : index
    %48 = vector.load %arg9[%c0_27, %c0_28] : memref<2x72xf32, #tpu.memory_space<vmem>>, vector<2x72xf32>
    %c0_29 = arith.constant 0 : index
    %c0_30 = arith.constant 0 : index
    %49 = vector.load %arg10[%c0_29, %c0_30] : memref<72x392xbf16, #tpu.memory_space<vmem>>, vector<72x392xbf16>
    %50 = arith.extf %49 : vector<72x392xbf16> to vector<72x392xf32>
    %cst_31 = arith.constant dense<0.000000e+00> : vector<2x392xf32>
    %51 = tpu.matmul %47, %50, %cst_31 {dimension_numbers = #tpu.dot_dimension_numbers<[1], [0], [0], [1], [0, 0, 1, 1], [], []>} : vector<2x72xf32>, vector<72x392xf32>, vector<2x392xf32> -> vector<2x392xf32>
    %cst_32 = arith.constant dense<0.000000e+00> : vector<2x392xf32>
    %52 = tpu.matmul %48, %50, %cst_32 {dimension_numbers = #tpu.dot_dimension_numbers<[1], [0], [0], [1], [0, 0, 1, 1], [], []>} : vector<2x72xf32>, vector<72x392xf32>, vector<2x392xf32> -> vector<2x392xf32>
    %53 = tpu.iota {dimensions = array<i32: 1>} : vector<2x392xi32>
    %54 = arith.sitofp %53 : vector<2x392xi32> to vector<2x392xf32>
    %55 = arith.cmpf oeq, %52, %54 : vector<2x392xf32>
    %cst_33 = arith.constant 0.000000e+00 : f32
    %56 = vector.broadcast %cst_33 : f32 to vector<2x392xf32>
    %57 = arith.select %55, %51, %56 : vector<2x392xi1>, vector<2x392xf32>
    %c0_34 = arith.constant 0 : index
    %c0_35 = arith.constant 0 : index
    %58 = vector.load %arg11[%c0_34, %c0_35] : memref<392x768xbf16, #tpu.memory_space<vmem>>, vector<392x768xbf16>
    %c0_36 = arith.constant 0 : index
    %c0_37 = arith.constant 0 : index
    %59 = vector.load %arg12[%c0_36, %c0_37] : memref<1x768xf32, #tpu.memory_space<vmem>>, vector<1x768xf32>
    %c0_38 = arith.constant 0 : index
    %c0_39 = arith.constant 0 : index
    %60 = vector.load %arg13[%c0_38, %c0_39] : memref<768x3xbf16, #tpu.memory_space<vmem>>, vector<768x3xbf16>
    %61 = arith.extf %60 : vector<768x3xbf16> to vector<768x3xf32>
    %c0_40 = arith.constant 0 : index
    %c0_41 = arith.constant 0 : index
    %62 = vector.load %arg14[%c0_40, %c0_41] : memref<3x768xbf16, #tpu.memory_space<vmem>>, vector<3x768xbf16>
    %63 = arith.extf %62 : vector<3x768xbf16> to vector<3x768xf32>
    %c0_42 = arith.constant 0 : index
    %c0_43 = arith.constant 0 : index
    %64 = vector.load %arg15[%c0_42, %c0_43] : memref<1x768xf32, #tpu.memory_space<vmem>>, vector<1x768xf32>
    %c0_44 = arith.constant 0 : index
    %c0_45 = arith.constant 0 : index
    %65 = vector.load %arg16[%c0_44, %c0_45] : memref<1x768xf32, #tpu.memory_space<vmem>>, vector<1x768xf32>
    %66 = arith.truncf %57 : vector<2x392xf32> to vector<2x392xbf16>
    %cst_46 = arith.constant dense<0.000000e+00> : vector<2x768xf32>
    %67 = tpu.matmul %66, %58, %cst_46 {dimension_numbers = #tpu.dot_dimension_numbers<[1], [0], [0], [1], [0, 0, 1, 1], [], []>} : vector<2x392xbf16>, vector<392x768xbf16>, vector<2x768xf32> -> vector<2x768xf32>
    %68 = vector.broadcast %59 : vector<1x768xf32> to vector<2x768xf32>
    %69 = arith.addf %67, %68 : vector<2x768xf32>
    %cst_47 = arith.constant dense<0.000000e+00> : vector<768xf32>
    %70 = vector.multi_reduction <add>, %69, %cst_47 [0] : vector<2x768xf32> to vector<768xf32>
    %71 = vector.shape_cast %70 : vector<768xf32> to vector<1x768xf32>
    %72 = arith.mulf %69, %69 : vector<2x768xf32>
    %cst_48 = arith.constant dense<0.000000e+00> : vector<768xf32>
    %73 = vector.multi_reduction <add>, %72, %cst_48 [0] : vector<2x768xf32> to vector<768xf32>
    %74 = vector.shape_cast %73 : vector<768xf32> to vector<1x768xf32>
    %75 = tpu.concatenate %71, %74 in 0 : vector<1x768xf32>, vector<1x768xf32> -> vector<2x768xf32>
    %cst_49 = arith.constant dense<0.000000e+00> : vector<2x3xf32>
    %76 = tpu.matmul %75, %61, %cst_49 {dimension_numbers = #tpu.dot_dimension_numbers<[1], [0], [0], [1], [0, 0, 1, 1], [], []>} : vector<2x768xf32>, vector<768x3xf32>, vector<2x3xf32> -> vector<2x3xf32>
    %cst_50 = arith.constant dense<0.000000e+00> : vector<2x768xf32>
    %77 = tpu.matmul %76, %63, %cst_50 {dimension_numbers = #tpu.dot_dimension_numbers<[1], [0], [0], [1], [0, 0, 1, 1], [], []>} : vector<2x3xf32>, vector<3x768xf32>, vector<2x768xf32> -> vector<2x768xf32>
    %cst_51 = arith.constant 0.001953125 : f32
    %78 = vector.broadcast %cst_51 : f32 to vector<2x768xf32>
    %79 = arith.mulf %77, %78 : vector<2x768xf32>
    %80 = vector.extract_strided_slice %79 {offsets = [0, 0], sizes = [1, 768], strides = [1, 1]} : vector<2x768xf32> to vector<1x768xf32>
    %81 = vector.extract_strided_slice %79 {offsets = [1, 0], sizes = [1, 768], strides = [1, 1]} : vector<2x768xf32> to vector<1x768xf32>
    %82 = arith.mulf %80, %80 : vector<1x768xf32>
    %83 = arith.subf %81, %82 : vector<1x768xf32>
    %cst_52 = arith.constant 0.000000e+00 : f32
    %84 = vector.broadcast %cst_52 : f32 to vector<1x768xf32>
    %85 = arith.maximumf %83, %84 : vector<1x768xf32>
    %86 = vector.broadcast %80 : vector<1x768xf32> to vector<2x768xf32>
    %87 = arith.subf %69, %86 : vector<2x768xf32>
    %cst_53 = arith.constant 9.99999974E-6 : f32
    %88 = vector.broadcast %cst_53 : f32 to vector<1x768xf32>
    %89 = arith.addf %85, %88 : vector<1x768xf32>
    %90 = math.rsqrt %89 : vector<1x768xf32>
    %91 = arith.mulf %90, %64 : vector<1x768xf32>
    %92 = vector.broadcast %91 : vector<1x768xf32> to vector<2x768xf32>
    %93 = arith.mulf %87, %92 : vector<2x768xf32>
    %94 = vector.broadcast %65 : vector<1x768xf32> to vector<2x768xf32>
    %95 = arith.addf %93, %94 : vector<2x768xf32>
    %c0_54 = arith.constant 0 : index
    %c0_55 = arith.constant 0 : index
    %96 = vector.load %arg17[%c0_54, %c0_55] : memref<2x768xf32, #tpu.memory_space<vmem>>, vector<2x768xf32>
    tpu.vector_store %arg17[%c0_54, %c0_55], %95 {strides = array<i32>} : memref<2x768xf32, #tpu.memory_space<vmem>>, vector<2x768xf32>,
    return
  }
}

</mosaic_0001>

<bundles_post_ra>
// kernel: fwd.1
= control target key start
LH: loop header
LB: loop body
LE: loop exit
PB: predicated region body
PF: predicated region fallthrough
CT: control target
= control target key end

     0   :  { %vm66_vm0 = vcmask 261120   ;;  %vm123_vm1 = vcmask 1041408   ;;  %vm119_vm2 = vcmask 31744   ;;  %vm140_vm3 = vcmask 582656   ;;  %s5229_s1 = inlined_call_operand.vmem [shape: f32[32,4], index: 1, kind: input, shape index: {}]   ;;  %s5230_s2 = inlined_call_operand.vmem [shape: f32[1,4], index: 2, kind: input, shape index: {}]   ;;  %s5231_s0 = inlined_call_operand.vmem [shape: f32[2,32], index: 0, kind: input, shape index: {}]   ;;  %s5232_s4 = inlined_call_operand.vmem [shape: f32[1,72], index: 4, kind: input, shape index: {}]   ;;  %s5233_s3 = inlined_call_operand.vmem [shape: bf16[4,72], index: 3, kind: input, shape index: {}]   ;;  %s5234_s5 = inlined_call_operand.vmem [shape: bf16[72,8], index: 5, kind: input, shape index: {}]   ;;  %s5235_s7 = inlined_call_operand.vmem [shape: f32[1,72], index: 7, kind: input, shape index: {}]   ;;  %s5236_s6 = inlined_call_operand.vmem [shape: bf16[8,72], index: 6, kind: input, shape index: {}]   ;;  %s5237_s8 = inlined_call_operand.vmem [shape: f32[1,72], index: 8, kind: input, shape index: {}]   ;;  %s5238_s10 = inlined_call_operand.vmem [shape: bf16[72,392], index: 10, kind: input, shape index: {}]   ;;  %s5239_s11 = inlined_call_operand.vmem [shape: bf16[392,768], index: 11, kind: input, shape index: {}]   ;;  %s5240_s9 = inlined_call_operand.vmem [shape: f32[2,72], index: 9, kind: input, shape index: {}]   ;;  %s5241_s13 = inlined_call_operand.vmem [shape: bf16[768,3], index: 13, kind: input, shape index: {}]   ;;  %s5242_s12 = inlined_call_operand.vmem [shape: f32[1,768], index: 12, kind: input, shape index: {}]   ;;  %s5243_s14 = inlined_call_operand.vmem [shape: bf16[3,768], index: 14, kind: input, shape index: {}]   ;;  %s5244_s15 = inlined_call_operand.vmem [shape: f32[1,768], index: 15, kind: input, shape index: {}]   ;;  %s5245_s16 = inlined_call_operand.vmem [shape: f32[1,768], index: 16, kind: input, shape index: {}]   ;;  %s5246_s17 = inlined_call_operand.vmem [shape: f32[2,768], index: 17, kind: output, shape index: {}]  }
   0x1   :  { %5248 = sst [smem:[#allocation2_spill]] %s5229_s1  ;;  %v57_v4 = vld [vmem:[%s5231_s0] sm:$0x3]  ;;  %v3482_v14 = vld [vmem:[%s5234_s5 + $0x18] sm:$0xff]   ;;  %v3481_v17 = vld [vmem:[%s5234_s5 + $0x10] sm:$0xff]   ;;  %vm156_vm4 = vcmask 1040384  }
   0x2   :  { %5249 = sst [smem:[#allocation3_spill]] %s5230_s2  ;;  %v91_v5 = vld [vmem:[%s5233_s3] sm:$0x3]  ;;  %v3287_v15 = vunpack.c.h.bf16 %v3482_v14  ;;  %v3286_v16 = vunpack.c.l.bf16 %v3482_v14  ;;  %v3283_v18 = vunpack.c.h.bf16 %v3481_v17  ;;  %v3282_v19 = vunpack.c.l.bf16 %v3481_v17  ;;  %v3480_v20 = vld [vmem:[%s5234_s5 + $0x8] sm:$0xff]   ;;  %v3706_v55 = vld [vmem:[%s5238_s10 + $0x70] sm:$0xff] }
   0x3   :  { %s5250_s26 = sld [smem:[#allocation2_spill]]  ;;  %v125_v6 = vsel %vm123_vm1, %v91_v5, 0  ;;  %v101_v12 = vld [vmem:[%s5234_s5 + $0x20] sm:$0xf]  ;;  %v3279_v21 = vunpack.c.h.bf16 %v3480_v20  ;;  %v3278_v22 = vunpack.c.l.bf16 %v3480_v20  ;;  %vm158_vm5 = vcmask 588800   ;;  %v3697_v50 = vld [vmem:[%s5238_s10 + $0x88] sm:$0xff] }
   0x4   :  { %134 = vmatpush.bf16.msra.mxu1 %v125_v6  ;;  %s5251_s24 = sld [smem:[#allocation3_spill]]  ;;  %v110_v13 = vunpack.c.l.bf16 %v101_v12  ;;  %v3273_v23 = vld [vmem:[%s5234_s5] sm:$0xff]   ;;  %vm182_vm6 = vcmask 64512   ;;  %v290_v53 = vunpack.c.l.bf16 %v3697_v50  ;;  %v291_v54 = vunpack.c.h.bf16 %v3697_v50  ;;  %v3711_v56 = vld [vmem:[%s5238_s10 + $0x78] sm:$0xff]  ;;  %v3733_v62 = vld [vmem:[%s5238_s10 + $0x68] sm:$0xff] }
   0x5   :  { %v3275_v24 = vunpack.c.h.bf16 %v3273_v23  ;;  %v3274_v25 = vunpack.c.l.bf16 %v3273_v23  ;;  %v3531_v26 = vld [vmem:[%s5232_s4] ss:$0 sm:$0xff]  ;;  %v284_v57 = vunpack.c.l.bf16 %v3706_v55  ;;  %v285_v58 = vunpack.c.h.bf16 %v3706_v55 }
   0x6   :  { %169 = vmatpush.msra.mxu2 %v110_v13  ;;  %v111_v46 = vld [vmem:[%s5236_s6] sm:$0xf]  ;;  %v286_v59 = vunpack.c.l.bf16 %v3711_v56  ;;  %v287_v60 = vunpack.c.h.bf16 %v3711_v56  ;;  %vm1577_vm10 = vcmask 1043456  }
   0x7   :  { %v112_v47 = vunpack.c.l.bf16 %v111_v46  ;;  %v3692_v49 = vld [vmem:[%s5238_s10 + $0x80] sm:$0xff] }
   0x8   :  { %170 = vmatpush.msra.mxu2 %v3287_v15  ;;  %v288_v51 = vunpack.c.l.bf16 %v3692_v49  ;;  %v289_v52 = vunpack.c.h.bf16 %v3692_v49  ;;  %v3728_v61 = vld [vmem:[%s5238_s10 + $0x60] sm:$0xff]  ;;  %v3794_v15 = vld [vmem:[%s5238_s10 + $0x30] sm:$0xff] }
   0x9   :  { %v61_v0 = vld [vmem:[%s5250_s26 + $0x18] sm:$0xff]  ;;  %v60_v1 = vld [vmem:[%s5250_s26 + $0x10] sm:$0xff]  ;;  %v59_v2 = vld [vmem:[%s5250_s26 + $0x8] sm:$0xff]  ;;  %201 = vmatpush.msra.mxu3 %v112_v47  ;;  %v280_v63 = vunpack.c.l.bf16 %v3728_v61  ;;  %v268_v17 = vunpack.c.l.bf16 %v3794_v15 }
   0xa   :  { %82 = vmatpush.msra.mxu0 %v61_v0  ;;  %v58_v3 = vld [vmem:[%s5250_s26] sm:$0xff]  ;;  %171 = vmatpush.msra.mxu2 %v3286_v16  ;;  %v281_v0 = vunpack.c.h.bf16 %v3728_v61  ;;  %v3799_v16 = vld [vmem:[%s5238_s10 + $0x38] sm:$0xff]  ;;  %v2650_v61 = vld [vmem:[%s5239_s11 + $0x150] sm:$0xf] }
   0xb   :  { %v3530_v7 = vld [vmem:[%s5251_s24] ss:$0 sm:$0xff]  ;;  %302 = vmatpush.msrb.mxu3 %v288_v51  ;;  %322 = vmatpush.msrb.mxu1 %v289_v52  ;;  %v271_v20 = vunpack.c.h.bf16 %v3799_v16 }
   0xc   :  { %83 = vmatpush.msra.mxu0 %v60_v1  ;;  %172 = vmatpush.msra.mxu2 %v3283_v18  ;;  %v282_v1 = vunpack.c.l.bf16 %v3733_v62  ;;  %v269_v18 = vunpack.c.h.bf16 %v3794_v15 }
   0xd   :  { %303 = vmatpush.msrb.mxu3 %v284_v57  ;;  %323 = vmatpush.msrb.mxu1 %v285_v58 }
   0xe   :  { %84 = vmatpush.msra.mxu0 %v59_v2  ;;  %173 = vmatpush.msra.mxu2 %v3282_v19  ;;  %v283_v2 = vunpack.c.h.bf16 %v3733_v62  ;;  %v270_v19 = vunpack.c.l.bf16 %v3799_v16  ;;  %v3173_v62 = vld [vmem:[%s5239_s11 + $0x164] sm:$0xf0]  ;;  %v2602_v16 = vld [vmem:[%s5239_s11 + $0xf0] sm:$0xf] }
   0xf   :  { %304 = vmatpush.msrb.mxu3 %v280_v63  ;;  %324 = vmatpush.msrb.mxu1 %v281_v0 }
  0x10   :  { %85 = vmatpush.msra.mxu0 %v58_v3  ;;  %174 = vmatpush.msra.mxu2 %v3279_v21  ;;  %v3750_v3 = vld [vmem:[%s5238_s10 + $0x50] sm:$0xff]  ;;  %v3816_v21 = vld [vmem:[%s5238_s10 + $0x20] sm:$0xff] }
  0x11   :  { %2468 = vmatmul.msk.f32.vlgmr.msra.gmra.mxu0 %vm66_vm0, %v57_v4  ;;  %v3755_v4 = vld [vmem:[%s5238_s10 + $0x58] sm:$0xff]  ;;  %v276_v5 = vunpack.c.l.bf16 %v3750_v3  ;;  %v277_v6 = vunpack.c.h.bf16 %v3750_v3  ;;  %v264_v23 = vunpack.c.l.bf16 %v3816_v21 }
  0x12   :  { %175 = vmatpush.msra.mxu2 %v3278_v22  ;;  %342 = vmatpush.msrb.mxu0 %v290_v53  ;;  %v3821_v22 = vld [vmem:[%s5238_s10 + $0x28] sm:$0xff] }
  0x13   :  { %305 = vmatpush.msrb.mxu3 %v276_v5  ;;  %325 = vmatpush.msrb.mxu1 %v277_v6 }
  0x14   :  { %176 = vmatpush.msra.mxu2 %v3275_v24  ;;  %343 = vmatpush.msrb.mxu0 %v286_v59  ;;  %v265_v24 = vunpack.c.h.bf16 %v3816_v21  ;;  %v3209_v21 = vld [vmem:[%s5239_s11 + $0x284] sm:$0xf0] }
  0x16   :  { %177 = vmatpush.msra.mxu2 %v3274_v25  ;;  %344 = vmatpush.msrb.mxu0 %v282_v1  ;;  %v266_v25 = vunpack.c.l.bf16 %v3821_v22 }
  0x18   :  { %362 = vmatpush.msrb.mxu2 %v291_v54 }
  0x1a   :  { %363 = vmatpush.msrb.mxu2 %v287_v60 }
  0x1c   :  { %364 = vmatpush.msrb.mxu2 %v283_v2 }
  0x8e   :  { %v87_v8 = vpop.f32.mrf.mxu0 }
  0x8f   :  { %v88_v9 = vadd.f32 %v3530_v7, %v87_v8  ;;  %v278_v7 = vunpack.c.l.bf16 %v3755_v4  ;;  %v279_v8 = vunpack.c.h.bf16 %v3755_v4  ;;  %v2651_v4 = vor.u32 %v3173_v62, %v2650_v61  ;;  %v2914_v62 = vld [vmem:[%s5239_s11 + $0x360] sm:$0xf] }
  0x91   :  { %v90_v10 = vmax.f32 %v88_v9, 0.0  ;;  %v3772_v9 = vld [vmem:[%s5238_s10 + $0x40] sm:$0xff]  ;;  %345 = vmatpush.msrb.mxu0 %v278_v7  ;;  %365 = vmatpush.msrb.mxu2 %v279_v8 }
  0x92   :  { %v273_v12 = vunpack.c.h.bf16 %v3772_v9 }
  0x93   :  { %v115_v11 = vpack.c.bf16 %v90_v10, %v90_v10  ;;  %v3777_v10 = vld [vmem:[%s5238_s10 + $0x48] sm:$0xff] }
  0x94   :  { %v274_v13 = vunpack.c.l.bf16 %v3777_v10  ;;  %v275_v14 = vunpack.c.h.bf16 %v3777_v10  ;;  %326 = vmatpush.msrb.mxu1 %v273_v12 }
  0x95   :  { %2469 = vmatmul.msk.bf16.vlgmr.msra.gmra.mxu1 %vm119_vm2, %v115_v11  ;;  %v272_v11 = vunpack.c.l.bf16 %v3772_v9  ;;  %v3215_v9 = vld [vmem:[%s5239_s11 + $0x2b4] sm:$0xf0] }
  0x96   :  { %346 = vmatpush.msrb.mxu0 %v274_v13  ;;  %366 = vmatpush.msrb.mxu2 %v275_v14 }
  0x97   :  { %306 = vmatpush.msrb.mxu3 %v272_v11  ;;  %327 = vmatpush.msrb.mxu1 %v269_v18 }
  0x98   :  { %347 = vmatpush.msrb.mxu0 %v270_v19  ;;  %367 = vmatpush.msrb.mxu2 %v271_v20 }
  0x99   :  { %307 = vmatpush.msrb.mxu3 %v268_v17  ;;  %328 = vmatpush.msrb.mxu1 %v265_v24 }
  0x9a   :  { %348 = vmatpush.msrb.mxu0 %v266_v25 }
  0x9b   :  { %308 = vmatpush.msrb.mxu3 %v264_v23 }
 0x112   :  { %v136_v27 = vpop.f32.mrf.mxu1 }
 0x113   :  { %v3678_v28 = vadd.f32 %v3531_v26, %v136_v27  ;;  %v267_v26 = vunpack.c.h.bf16 %v3821_v22  ;;  %v240_v27 = vld [vmem:[%s5238_s10 + $0x10] sm:$0xff] }
 0x115   :  { %v141_v29 = vsel %vm140_vm3, %v3678_v28, 0.0  ;;  %v148_v30 = vmul.f32 %v3678_v28, %v3678_v28  ;;  %368 = vmatpush.msrb.mxu2 %v267_v26 }
 0x116   :  { %v142_v31 = vrot.slane %v141_v29, 4 }
 0x117   :  { %v149_v32 = vsel %vm140_vm3, %v148_v30, 0.0  ;;  %v260_v30 = vunpack.c.l.bf16 %v240_v27  ;;  %vm2142_vm3 = vcmask 1042432  }
 0x118   :  { %v143_v33 = vadd.f32 %v142_v31, %v141_v29  ;;  %v150_v34 = vrot.slane %v149_v32, 4  ;;  %v241_v29 = vld [vmem:[%s5238_s10 + $0x18] sm:$0xff]  ;;  %v261_v31 = vunpack.c.h.bf16 %v240_v27  ;;  %v2652_v27 = vld [vmem:[%s5239_s11 + $0x168] sm:$0xf0] }
 0x119   :  { %309 = vmatpush.msrb.mxu3 %v260_v30 }
 0x11a   :  { %v144_v35 = vrot.slane %v143_v33, 2  ;;  %v151_v36 = vadd.f32 %v150_v34, %v149_v32  ;;  %v138_v37 = vpop.f32.mrf.mxu1  ;;  %v262_v32 = vunpack.c.l.bf16 %v241_v29  ;;  %v238_v34 = vld [vmem:[%s5238_s10] sm:$0xff]  ;;  %329 = vmatpush.msrb.mxu1 %v261_v31 }
 0x11b   :  { %v257_v37 = vunpack.c.h.bf16 %v238_v34 }
 0x11c   :  { %v145_v38 = vadd.f32 %v144_v35, %v143_v33  ;;  %v152_v39 = vrot.slane %v151_v36, 2  ;;  %v263_v33 = vunpack.c.h.bf16 %v241_v29  ;;  %v239_v35 = vld [vmem:[%s5238_s10 + $0x8] sm:$0xff]  ;;  %349 = vmatpush.msrb.mxu0 %v262_v32  ;;  %v237_v29 = vld [vmem:[%s5240_s9] sm:$0x3] }
 0x11d   :  { %330 = vmatpush.msrb.mxu1 %v257_v37 }
 0x11e   :  { %v146_v40 = vrot.slane %v145_v38, 1  ;;  %v153_v41 = vadd.f32 %v152_v39, %v151_v36  ;;  %v256_v36 = vunpack.c.l.bf16 %v238_v34  ;;  %v259_v39 = vunpack.c.h.bf16 %v239_v35  ;;  %369 = vmatpush.msrb.mxu2 %v263_v33  ;;  %v2770_v34 = vld [vmem:[%s5239_s11 + $0x240] sm:$0xf] }
 0x11f   :  { %405 = vmatpush.msra.mxu1 %v289_v52  ;;  %v3532_v52 = vld [vmem:[%s5235_s7] ss:$0 sm:$0xff] }
 0x120   :  { %v154_v42 = vrot.slane %v153_v41, 1  ;;  %v147_v43 = vadd.f32 %v146_v40, %v145_v38  ;;  %v258_v38 = vunpack.c.l.bf16 %v239_v35  ;;  %310 = vmatpush.msrb.mxu3 %v256_v36  ;;  %370 = vmatpush.msrb.mxu2 %v259_v39  ;;  %v3203_v35 = vld [vmem:[%s5239_s11 + $0x254] sm:$0xf0] }
 0x121   :  { %406 = vmatpush.msra.mxu1 %v285_v58 }
 0x122   :  { %v155_v44 = vadd.f32 %v154_v42, %v153_v41  ;;  %350 = vmatpush.msrb.mxu0 %v258_v38 }
 0x123   :  { %407 = vmatpush.msra.mxu1 %v281_v0 }
 0x124   :  { %v157_v45 = vsel %vm156_vm4, %v147_v43, %v155_v44  ;;  %425 = vmatpush.msra.mxu0 %v290_v53 }
 0x125   :  { %2470 = vmatmul.msk.f32.vlgmr.msra.gmra.mxu2 %vm158_vm5, %v157_v45  ;;  %408 = vmatpush.msra.mxu1 %v277_v6  ;;  %v3167_v6 = vld [vmem:[%s5239_s11 + $0x134] sm:$0xf0] }
 0x126   :  { %445 = vmatpush.msra.mxu2 %v291_v54  ;;  %426 = vmatpush.msra.mxu0 %v286_v59  ;;  %v3533_v59 = vld [vmem:[%s5237_s8] ss:$0 sm:$0xff] }
 0x127   :  { %409 = vmatpush.msra.mxu1 %v273_v12  ;;  %v3010_v12 = vld [vmem:[%s5239_s11 + $0x420] sm:$0xf] }
 0x128   :  { %446 = vmatpush.msra.mxu2 %v287_v60  ;;  %427 = vmatpush.msra.mxu0 %v282_v1  ;;  %v3034_v1 = vld [vmem:[%s5239_s11 + $0x450] sm:$0xf] }
 0x129   :  { %410 = vmatpush.msra.mxu1 %v269_v18 }
 0x12a   :  { %447 = vmatpush.msra.mxu2 %v283_v2  ;;  %428 = vmatpush.msra.mxu0 %v278_v7  ;;  %v3269_v2 = vld [vmem:[%s5239_s11 + $0x464] sm:$0xf0] }
 0x12b   :  { %411 = vmatpush.msra.mxu1 %v265_v24  ;;  %v3035_v10 = vor.u32 %v3269_v2, %v3034_v1  ;;  %v3257_v24 = vld [vmem:[%s5239_s11 + $0x404] sm:$0xf0] }
 0x12c   :  { %448 = vmatpush.msra.mxu2 %v279_v8  ;;  %429 = vmatpush.msra.mxu0 %v274_v13  ;;  %v2818_v8 = vld [vmem:[%s5239_s11 + $0x2a0] sm:$0xf]  ;;  %v3263_v13 = vld [vmem:[%s5239_s11 + $0x434] sm:$0xf0]  ;;  %v3137_v2 = vld [vmem:[%s5239_s11 + $0x44] sm:$0xf0] }
 0x12d   :  { %412 = vmatpush.msra.mxu1 %v261_v31  ;;  %v2819_v18 = vor.u32 %v3215_v9, %v2818_v8  ;;  %v3011_v22 = vor.u32 %v3263_v13, %v3010_v12  ;;  %v2578_v31 = vld [vmem:[%s5239_s11 + $0xc0] sm:$0xf]  ;;  %v3131_v8 = vld [vmem:[%s5239_s11 + $0x14] sm:$0xf0] }
 0x12e   :  { %449 = vmatpush.msra.mxu2 %v275_v14  ;;  %430 = vmatpush.msra.mxu0 %v270_v19  ;;  %v2794_v19 = vld [vmem:[%s5239_s11 + $0x270] sm:$0xf]  ;;  %v2674_v12 = vld [vmem:[%s5239_s11 + $0x180] sm:$0xf]  ;;  %v3179_v13 = vld [vmem:[%s5239_s11 + $0x194] sm:$0xf0] }
 0x12f   :  { %413 = vmatpush.msra.mxu1 %v257_v37 }
 0x130   :  { %450 = vmatpush.msra.mxu2 %v271_v20  ;;  %431 = vmatpush.msra.mxu0 %v266_v25 }
 0x132   :  { %451 = vmatpush.msra.mxu2 %v267_v26  ;;  %432 = vmatpush.msra.mxu0 %v262_v32  ;;  %v3170_v26 = vld [vmem:[%s5239_s11 + $0x154] sm:$0xf]  ;;  %v3155_v32 = vld [vmem:[%s5239_s11 + $0xd4] sm:$0xf0] }
 0x133   :  { %v2655_v37 = vor.u32 %v3170_v26, %v2652_v27  ;;  %v3206_v27 = vld [vmem:[%s5239_s11 + $0x274] sm:$0xf] }
 0x134   :  { %452 = vmatpush.msra.mxu2 %v263_v33  ;;  %433 = vmatpush.msra.mxu0 %v258_v38  ;;  %v2795_v33 = vor.u32 %v3209_v21, %v2794_v19  ;;  %v2962_v38 = vld [vmem:[%s5239_s11 + $0x3c0] sm:$0xf] }
 0x136   :  { %453 = vmatpush.msra.mxu2 %v259_v39  ;;  %v3251_v39 = vld [vmem:[%s5239_s11 + $0x3d4] sm:$0xf0] }
 0x1a8   :  { %v179_v48 = vpop.f32.mrf.mxu2 }
 0x1a9   :  { %2471 = vmatmul.msk.f32.vlgmr.msra.gmra.mxu3 %vm182_vm6, %v179_v48 }
 0x1aa   :  { %385 = vmatpush.msra.mxu3 %v288_v51 }
 0x1ac   :  { %386 = vmatpush.msra.mxu3 %v284_v57 }
 0x1ae   :  { %387 = vmatpush.msra.mxu3 %v280_v63  ;;  %v2842_v63 = vld [vmem:[%s5239_s11 + $0x2d0] sm:$0xf] }
 0x1b0   :  { %388 = vmatpush.msra.mxu3 %v276_v5  ;;  %v2626_v5 = vld [vmem:[%s5239_s11 + $0x120] sm:$0xf] }
 0x1b1   :  { %v2627_v15 = vor.u32 %v3167_v6, %v2626_v5 }
 0x1b2   :  { %389 = vmatpush.msra.mxu3 %v272_v11  ;;  %v3935_v11 = vld [vmem:[%s5239_s11 + $0x480] sm:$0xff] }
 0x1b3   :  { %v1274_v14 = vunpack.c.l.b16 %v3935_v11 }
 0x1b4   :  { %390 = vmatpush.msra.mxu3 %v268_v17  ;;  %v3161_v17 = vld [vmem:[%s5239_s11 + $0x104] sm:$0xf0] }
 0x1b5   :  { %v1424_v20 = vpack.c.b16 %v1274_v14, %v1274_v14  ;;  %v2844_v14 = vld [vmem:[%s5239_s11 + $0x2e8] sm:$0xf0] }
 0x1b6   :  { %391 = vmatpush.msra.mxu3 %v264_v23  ;;  %v2986_v23 = vld [vmem:[%s5239_s11 + $0x3f0] sm:$0xf] }
 0x1b7   :  { %v1579_v25 = vsel %vm1577_vm10, %v1424_v20, 0  ;;  %v3212_v20 = vld [vmem:[%s5239_s11 + $0x2a4] sm:$0xf] }
 0x1b8   :  { %392 = vmatpush.msra.mxu3 %v260_v30  ;;  %v2603_v30 = vor.u32 %v3161_v17, %v2602_v16  ;;  %v3036_v16 = vld [vmem:[%s5239_s11 + $0x468] sm:$0xf0] }
 0x1ba   :  { %393 = vmatpush.msra.mxu3 %v256_v36  ;;  %v2987_v36 = vor.u32 %v3257_v24, %v2986_v23  ;;  %v3260_v23 = vld [vmem:[%s5239_s11 + $0x424] sm:$0xf]  ;;  %v3012_v24 = vld [vmem:[%s5239_s11 + $0x438] sm:$0xf0] }
 0x1bb   :  { %v3015_v26 = vor.u32 %v3260_v23, %v3012_v24  ;;  %v458_v23 = vlaneseq }
 0x1bd   :  { %v459_v24 = vand.u32 127, %v458_v23 }
 0x22c   :  { %v203_v40 = vpop.f32.mrf.mxu3 }
 0x22d   :  { %v206_v41 = vmul.f32 0.055555556, %v203_v40  ;;  %v3164_v40 = vld [vmem:[%s5239_s11 + $0x124] sm:$0xf] }
 0x22f   :  { %v207_v42 = vmul.f32 %v206_v41, %v206_v41  ;;  %v213_v54 = vperm.slane %v206_v41, 0 }
 0x231   :  { %v209_v43 = vrot.slane %v207_v42, 7  ;;  %v214_v57 = vsub.f32 %v3678_v28, %v213_v54  ;;  %v3221_v28 = vld [vmem:[%s5239_s11 + $0x2e4] sm:$0xf0]  ;;  %v2579_v42 = vor.u32 %v3155_v32, %v2578_v31  ;;  %v3200_v31 = vld [vmem:[%s5239_s11 + $0x244] sm:$0xf] }
 0x232   :  { %v2843_v7 = vor.u32 %v3221_v28, %v2842_v63  ;;  %v3239_v63 = vld [vmem:[%s5239_s11 + $0x374] sm:$0xf0]  ;;  %v2772_v32 = vld [vmem:[%s5239_s11 + $0x258] sm:$0xf0] }
 0x233   :  { %v211_v44 = vsub.f32 %v206_v41, %v209_v43  ;;  %v2628_v41 = vld [vmem:[%s5239_s11 + $0x138] sm:$0xf0]  ;;  %v2554_v43 = vld [vmem:[%s5239_s11 + $0x90] sm:$0xf]  ;;  %v2915_v5 = vor.u32 %v3239_v63, %v2914_v62  ;;  %v2940_v63 = vld [vmem:[%s5239_s11 + $0x3a8] sm:$0xf0] }
 0x235   :  { %v212_v45 = vmax.f32 %v211_v44, 0.0  ;;  %v3149_v44 = vld [vmem:[%s5239_s11 + $0xa4] sm:$0xf0] }
 0x236   :  { %v2555_v54 = vor.u32 %v3149_v44, %v2554_v43  ;;  %v2748_v43 = vld [vmem:[%s5239_s11 + $0x228] sm:$0xf0] }
 0x237   :  { %v215_v46 = vadd.f32 1e-05, %v212_v45  ;;  %v2771_v45 = vor.u32 %v3203_v35, %v2770_v34  ;;  %v3152_v34 = vld [vmem:[%s5239_s11 + $0xc4] sm:$0xf]  ;;  %v2580_v35 = vld [vmem:[%s5239_s11 + $0xd8] sm:$0xf0] }
 0x239   :  { %3534 = vrsqrt.f32 %v215_v46  ;;  %vm222_vm8 = vweird.f32 %v215_v46 }
 0x23f   :  { %v3535_v47 = vpop.eup %3534 }
 0x240   :  { %v217_v48 = vmul.f32 %v3535_v47, %v215_v46  ;;  %vm223_vm7 = vweird.f32 %v3535_v47  ;;  %v2746_v46 = vld [vmem:[%s5239_s11 + $0x210] sm:$0xf] }
 0x241   :  { %vm224_vm9 = vmor %vm222_vm8, %vm223_vm7 }
 0x242   :  { %v218_v49 = vmul.f32 %v3535_v47, %v217_v48  ;;  %v2963_v48 = vor.u32 %v3251_v39, %v2962_v38  ;;  %v3233_v38 = vld [vmem:[%s5239_s11 + $0x344] sm:$0xf0]  ;;  %v3254_v39 = vld [vmem:[%s5239_s11 + $0x3f4] sm:$0xf] }
 0x244   :  { %v219_v50 = vmul.f32 0.5, %v218_v49  ;;  %v2631_v49 = vor.u32 %v3164_v40, %v2628_v41  ;;  %v2988_v41 = vld [vmem:[%s5239_s11 + $0x408] sm:$0xf0] }
 0x245   :  { %v2991_v44 = vor.u32 %v3254_v39, %v2988_v41 }
 0x246   :  { %v220_v51 = vsub.f32 1.5, %v219_v50  ;;  %v2938_v50 = vld [vmem:[%s5239_s11 + $0x390] sm:$0xf] }
 0x248   :  { %v221_v53 = vmul.f32 %v3535_v47, %v220_v51  ;;  %v3245_v51 = vld [vmem:[%s5239_s11 + $0x3a4] sm:$0xf0] }
 0x24a   :  { %v225_v55 = vsel %vm224_vm9, %v3535_v47, %v221_v53  ;;  %v3197_v47 = vld [vmem:[%s5239_s11 + $0x224] sm:$0xf0]  ;;  %v2604_v53 = vld [vmem:[%s5239_s11 + $0x108] sm:$0xf0] }
 0x24b   :  { %v229_v56 = vmul.f32 %v3532_v52, %v225_v55  ;;  %v3158_v52 = vld [vmem:[%s5239_s11 + $0xf4] sm:$0xf]  ;;  %v2530_v55 = vld [vmem:[%s5239_s11 + $0x60] sm:$0xf] }
 0x24c   :  { %v2607_v61 = vor.u32 %v3158_v52, %v2604_v53  ;;  %v2964_v53 = vld [vmem:[%s5239_s11 + $0x3d8] sm:$0xf0] }
 0x24d   :  { %v230_v58 = vperm.slane %v229_v56, 1  ;;  %v2747_v56 = vor.u32 %v3197_v47, %v2746_v46  ;;  %v3146_v46 = vld [vmem:[%s5239_s11 + $0x94] sm:$0xf]  ;;  %v2556_v47 = vld [vmem:[%s5239_s11 + $0xa8] sm:$0xf0] }
 0x24f   :  { %v231_v60 = vmul.f32 %v230_v58, %v214_v57  ;;  %v3143_v57 = vld [vmem:[%s5239_s11 + $0x74] sm:$0xf0]  ;;  %v2722_v58 = vld [vmem:[%s5239_s11 + $0x1e0] sm:$0xf] }
 0x250   :  { %v2531_v28 = vor.u32 %v3143_v57, %v2530_v55  ;;  %v1275_v55 = vunpack.c.h.b16 %v3935_v11  ;;  %v2724_v57 = vld [vmem:[%s5239_s11 + $0x1f8] sm:$0xf0]  ;;  %v3242_v11 = vld [vmem:[%s5239_s11 + $0x394] sm:$0xf] }
 0x251   :  { %v235_v0 = vadd.f32 %v3533_v59, %v231_v60  ;;  %v3191_v59 = vld [vmem:[%s5239_s11 + $0x1f4] sm:$0xf0]  ;;  %v2939_v60 = vor.u32 %v3245_v51, %v2938_v50  ;;  %v3248_v51 = vld [vmem:[%s5239_s11 + $0x3c4] sm:$0xf] }
 0x252   :  { %v2723_v1 = vor.u32 %v3191_v59, %v2722_v58  ;;  %v3227_v50 = vld [vmem:[%s5239_s11 + $0x314] sm:$0xf0]  ;;  %v3140_v59 = vld [vmem:[%s5239_s11 + $0x64] sm:$0xf] }
 0x253   :  { %v236_v3 = vmax.f32 %v235_v0, 0.0  ;;  %v2506_v0 = vld [vmem:[%s5239_s11 + $0x30] sm:$0xf] }
 0x254   :  { %v2507_v6 = vor.u32 %v3137_v2, %v2506_v0  ;;  %v2943_v0 = vor.u32 %v3242_v11, %v2940_v63  ;;  %v2700_v2 = vld [vmem:[%s5239_s11 + $0x1c8] sm:$0xf0]  ;;  %v3018_v11 = vld [vmem:[%s5239_s11 + $0x428] sm:$0xf]  ;;  %v3264_v63 = vld [vmem:[%s5239_s11 + $0x43c] sm:$0xf0] }
 0x255   :  { %2472 = vmatmul.msk.f32.vlgmr.msrb.gmra.mxu3 %vm158_vm5, %v236_v3  ;;  %2473 = vmatmul.msk.f32.vlgmr.msrb.gmra.mxu1 %vm158_vm5, %v236_v3 }
 0x256   :  { %2474 = vmatmul.msk.f32.vlgmr.msrb.gmra.mxu0 %vm158_vm5, %v236_v3  ;;  %2475 = vmatmul.msk.f32.vlgmr.msrb.gmra.mxu2 %vm158_vm5, %v236_v3  ;;  %v2698_v3 = vld [vmem:[%s5239_s11 + $0x1b0] sm:$0xf] }
 0x257   :  { %1596 = vmatpush.bf16.msrb.mxu3 %v2651_v4  ;;  %1609 = vmatpush.bf16.msrb.mxu1 %v2843_v7  ;;  %v3185_v4 = vld [vmem:[%s5239_s11 + $0x1c4] sm:$0xf0]  ;;  %v2482_v7 = vld [vmem:[%s5239_s11] sm:$0xf] }
 0x258   :  { %1622 = vmatpush.bf16.msrb.mxu0 %v3035_v10  ;;  %1642 = vmatpush.bf16.msrb.mxu2 %v1579_v25  ;;  %v2699_v9 = vor.u32 %v3185_v4, %v2698_v3  ;;  %v3218_v10 = vld [vmem:[%s5239_s11 + $0x2d4] sm:$0xf]  ;;  %v2483_v17 = vor.u32 %v3131_v8, %v2482_v7  ;;  %v3236_v7 = vld [vmem:[%s5239_s11 + $0x364] sm:$0xf]  ;;  %v2916_v8 = vld [vmem:[%s5239_s11 + $0x378] sm:$0xf0] }
 0x259   :  { %v2847_v19 = vor.u32 %v3218_v10, %v2844_v14  ;;  %v3134_v4 = vld [vmem:[%s5239_s11 + $0x34] sm:$0xf]  ;;  %v3176_v10 = vld [vmem:[%s5239_s11 + $0x184] sm:$0xf] }
 0x25a   :  { %v3128_v14 = vld [vmem:[%s5239_s11 + $0x4] sm:$0xf] }
 0x25b   :  { %1597 = vmatpush.bf16.msrb.mxu3 %v2627_v15  ;;  %1610 = vmatpush.bf16.msrb.mxu1 %v2819_v18  ;;  %v3266_v15 = vld [vmem:[%s5239_s11 + $0x454] sm:$0xf]  ;;  %v2675_v18 = vor.u32 %v3179_v13, %v2674_v12  ;;  %v2676_v12 = vld [vmem:[%s5239_s11 + $0x198] sm:$0xf0] }
 0x25c   :  { %1623 = vmatpush.bf16.msrb.mxu0 %v3011_v22  ;;  %v3039_v21 = vor.u32 %v3266_v15, %v3036_v16  ;;  %v2820_v22 = vld [vmem:[%s5239_s11 + $0x2b8] sm:$0xf0]  ;;  %v2679_v13 = vor.u32 %v3176_v10, %v2676_v12  ;;  %v3258_v10 = vld [vmem:[%s5239_s11 + $0x40c] sm:$0xf0] }
 0x25d   :  { %2476 = vmatmul.msk.f32.vlgmr.msra.gmra.mxu3 %vm158_vm5, %v237_v29  ;;  %2477 = vmatmul.msk.f32.vlgmr.msra.gmra.mxu1 %vm158_vm5, %v237_v29  ;;  %v2823_v25 = vor.u32 %v3212_v20, %v2820_v22  ;;  %v2484_v15 = vld [vmem:[%s5239_s11 + $0x18] sm:$0xf0]  ;;  %v3224_v20 = vld [vmem:[%s5239_s11 + $0x304] sm:$0xf] }
 0x25e   :  { %2478 = vmatmul.msk.f32.vlgmr.msra.gmra.mxu0 %vm158_vm5, %v237_v29  ;;  %2479 = vmatmul.msk.f32.vlgmr.msra.gmra.mxu2 %vm158_vm5, %v237_v29  ;;  %v2796_v29 = vld [vmem:[%s5239_s11 + $0x288] sm:$0xf0]  ;;  %v2487_v16 = vor.u32 %v3128_v14, %v2484_v15  ;;  %v2562_v14 = vld [vmem:[%s5239_s11 + $0x98] sm:$0xf]  ;;  %v3171_v15 = vld [vmem:[%s5239_s11 + $0x15c] sm:$0xf] }
 0x25f   :  { %1598 = vmatpush.bf16.msrb.mxu3 %v2603_v30  ;;  %1611 = vmatpush.bf16.msrb.mxu1 %v2795_v33  ;;  %v2799_v30 = vor.u32 %v3206_v27, %v2796_v29  ;;  %v2775_v33 = vor.u32 %v3200_v31, %v2772_v32  ;;  %v460_v29 = vadd.s32 128, %v459_v24  ;;  %v461_v31 = vadd.s32 256, %v459_v24 }
 0x260   :  { %1624 = vmatpush.bf16.msrb.mxu0 %v2987_v36  ;;  %1648 = vmatpush.bf16.msra.mxu2 %v2655_v37  ;;  %v2583_v36 = vor.u32 %v3152_v34, %v2580_v35  ;;  %v2890_v37 = vld [vmem:[%s5239_s11 + $0x330] sm:$0xf] }
 0x261   :  { %v2891_v40 = vor.u32 %v3233_v38, %v2890_v37  ;;  %v464_v32 = vcvt.s32.f32 %v460_v29  ;;  %v465_v35 = vcvt.s32.f32 %v461_v31  ;;  %v3174_v37 = vld [vmem:[%s5239_s11 + $0x16c] sm:$0xf0]  ;;  %v3165_v29 = vld [vmem:[%s5239_s11 + $0x12c] sm:$0xf] }
 0x263   :  { %1599 = vmatpush.bf16.msrb.mxu3 %v2579_v42  ;;  %1612 = vmatpush.bf16.msrb.mxu1 %v2771_v45  ;;  %v3194_v42 = vld [vmem:[%s5239_s11 + $0x214] sm:$0xf] }
 0x264   :  { %1625 = vmatpush.bf16.msrb.mxu0 %v2963_v48  ;;  %1649 = vmatpush.bf16.msra.mxu2 %v2631_v49  ;;  %v2751_v45 = vor.u32 %v3194_v42, %v2748_v43  ;;  %v2559_v48 = vor.u32 %v3146_v46, %v2556_v47  ;;  %v2866_v49 = vld [vmem:[%s5239_s11 + $0x300] sm:$0xf]  ;;  %v2634_v47 = vld [vmem:[%s5239_s11 + $0x128] sm:$0xf] }
 0x265   :  { %v2867_v52 = vor.u32 %v3227_v50, %v2866_v49  ;;  %v463_v50 = vcvt.s32.f32 %v459_v24  ;;  %v3485_v49 = vld [vmem:[%s5241_s13 + $0x18] sm:$0xff]  }
 0x267   :  { %1600 = vmatpush.bf16.msrb.mxu3 %v2555_v54  ;;  %1613 = vmatpush.bf16.msrb.mxu1 %v2747_v56  ;;  %v3188_v54 = vld [vmem:[%s5239_s11 + $0x1e4] sm:$0xf]  ;;  %v2967_v56 = vor.u32 %v3248_v51, %v2964_v53  ;;  %v3042_v51 = vld [vmem:[%s5239_s11 + $0x458] sm:$0xf] }
 0x268   :  { %1626 = vmatpush.bf16.msrb.mxu0 %v2939_v60  ;;  %1650 = vmatpush.bf16.msra.mxu2 %v2607_v61  ;;  %v2727_v58 = vor.u32 %v3188_v54, %v2724_v57  ;;  %v2532_v60 = vld [vmem:[%s5239_s11 + $0x78] sm:$0xf0]  ;;  %v1425_v61 = vpack.c.b16 %v1275_v55, %v1275_v55  ;;  %v2610_v55 = vld [vmem:[%s5239_s11 + $0xf8] sm:$0xf] }
 0x269   :  { %v2535_v62 = vor.u32 %v3140_v59, %v2532_v60  ;;  %v2850_v59 = vld [vmem:[%s5239_s11 + $0x2d8] sm:$0xf]  ;;  %v3222_v60 = vld [vmem:[%s5239_s11 + $0x2ec] sm:$0xf0] }
 0x26b   :  { %1601 = vmatpush.bf16.msrb.mxu3 %v2531_v28  ;;  %1614 = vmatpush.bf16.msrb.mxu1 %v2723_v1  ;;  %v1582_v28 = vsel %vm1577_vm10, %v1425_v61, 0  ;;  %v3182_v1 = vld [vmem:[%s5239_s11 + $0x1b4] sm:$0xf] }
 0x26c   :  { %1627 = vmatpush.bf16.msrb.mxu0 %v2915_v5  ;;  %1651 = vmatpush.bf16.msra.mxu2 %v2583_v36  ;;  %v2703_v3 = vor.u32 %v3182_v1, %v2700_v2  ;;  %v2508_v5 = vld [vmem:[%s5239_s11 + $0x48] sm:$0xf0]  ;;  %v2658_v36 = vld [vmem:[%s5239_s11 + $0x158] sm:$0xf]  ;;  %v2851_v2 = vor.u32 %v3222_v60, %v2850_v59  ;;  %v3132_v59 = vld [vmem:[%s5239_s11 + $0x1c] sm:$0xf0] }
 0x26d   :  { %v2659_v43 = vor.u32 %v3174_v37, %v2658_v36  ;;  %v2946_v36 = vld [vmem:[%s5239_s11 + $0x398] sm:$0xf]  ;;  %v3246_v37 = vld [vmem:[%s5239_s11 + $0x3ac] sm:$0xf0]  ;;  %v2730_v60 = vld [vmem:[%s5239_s11 + $0x1e8] sm:$0xf] }
 0x26f   :  { %1602 = vmatpush.bf16.msrb.mxu3 %v2507_v6  ;;  %1615 = vmatpush.bf16.msrb.mxu1 %v2699_v9  ;;  %v2511_v6 = vor.u32 %v3134_v4, %v2508_v5  ;;  %v2919_v9 = vor.u32 %v3236_v7, %v2916_v8  ;;  %v3019_v5 = vor.u32 %v3264_v63, %v3018_v11  ;;  %v2826_v7 = vld [vmem:[%s5239_s11 + $0x2a8] sm:$0xf]  ;;  %v3216_v8 = vld [vmem:[%s5239_s11 + $0x2bc] sm:$0xf0]  ;;  %v3219_v63 = vld [vmem:[%s5239_s11 + $0x2dc] sm:$0xf] }
 0x270   :  { %1628 = vmatpush.bf16.msrb.mxu0 %v2891_v40  ;;  %1652 = vmatpush.bf16.msra.mxu2 %v2559_v48  ;;  %v462_v40 = vadd.s32 384, %v459_v24  ;;  %v3168_v48 = vld [vmem:[%s5239_s11 + $0x13c] sm:$0xf0] }
 0x271   :  { %v2635_v54 = vor.u32 %v3168_v48, %v2634_v47  ;;  %v2754_v47 = vld [vmem:[%s5239_s11 + $0x218] sm:$0xf]  ;;  %v3198_v48 = vld [vmem:[%s5239_s11 + $0x22c] sm:$0xf0] }
 0x272   :  { %v466_v53 = vcvt.s32.f32 %v462_v40  ;;  %v2514_v40 = vld [vmem:[%s5239_s11 + $0x38] sm:$0xf] }
 0x273   :  { %1603 = vmatpush.bf16.msrb.mxu3 %v2483_v17  ;;  %1616 = vmatpush.bf16.msrb.mxu1 %v2675_v18  ;;  %v3230_v17 = vld [vmem:[%s5239_s11 + $0x334] sm:$0xf]  ;;  %v2892_v18 = vld [vmem:[%s5239_s11 + $0x348] sm:$0xf0] }
 0x274   :  { %1629 = vmatpush.bf16.msrb.mxu0 %v2867_v52  ;;  %1653 = vmatpush.bf16.msra.mxu2 %v2535_v62  ;;  %v3270_v52 = vld [vmem:[%s5239_s11 + $0x46c] sm:$0xf0] }
 0x275   :  { %v3043_v57 = vor.u32 %v3270_v52, %v3042_v51  ;;  %v2922_v52 = vld [vmem:[%s5239_s11 + $0x368] sm:$0xf] }
 0x277   :  { %1661 = vmatpush.bf16.msra.mxu3 %v2847_v19  ;;  %1674 = vmatpush.bf16.msra.mxu1 %v3039_v21  ;;  %v2895_v19 = vor.u32 %v3230_v17, %v2892_v18  ;;  %v2868_v21 = vld [vmem:[%s5239_s11 + $0x318] sm:$0xf0]  ;;  %v3150_v18 = vld [vmem:[%s5239_s11 + $0xac] sm:$0xf0] }
 0x278   :  { %1694 = vmatpush.bf16.msra.mxu0 %v1582_v28  ;;  %1654 = vmatpush.bf16.msra.mxu2 %v2511_v6  ;;  %v2871_v22 = vor.u32 %v3224_v20, %v2868_v21  ;;  %v3156_v6 = vld [vmem:[%s5239_s11 + $0xdc] sm:$0xf0]  ;;  %v3210_v20 = vld [vmem:[%s5239_s11 + $0x28c] sm:$0xf0]  ;;  %v2970_v21 = vld [vmem:[%s5239_s11 + $0x3c8] sm:$0xf]  ;;  %v2563_v24 = vor.u32 %v3150_v18, %v2562_v14 }
 0x279   :  { %v3228_v18 = vld [vmem:[%s5239_s11 + $0x31c] sm:$0xf0] }
 0x27a   :  { %v3486_v28 = vld [vmem:[%s5241_s13 + $0x20] sm:$0xff]  }
 0x27b   :  { %1662 = vmatpush.bf16.msra.mxu3 %v2823_v25  ;;  %1675 = vmatpush.bf16.msra.mxu1 %v3015_v26  ;;  %v4213_v25 = vld [vmem:[%s5239_s11 + $0x488] sm:$0xff] }
 0x27c   :  { %1655 = vmatpush.bf16.msra.mxu2 %v2487_v16  ;;  %v2660_v16 = vld [vmem:[%s5239_s11 + $0x170] sm:$0xf0] }
 0x27d   :  { %v2663_v23 = vor.u32 %v3171_v15, %v2660_v16  ;;  %v3213_v15 = vld [vmem:[%s5239_s11 + $0x2ac] sm:$0xf]  ;;  %v2828_v16 = vld [vmem:[%s5239_s11 + $0x2c0] sm:$0xf0] }
 0x27f   :  { %1663 = vmatpush.bf16.msra.mxu3 %v2799_v30  ;;  %1676 = vmatpush.bf16.msra.mxu1 %v2991_v44  ;;  %v1276_v30 = vunpack.c.l.b16 %v4213_v25 }
 0x283   :  { %1664 = vmatpush.bf16.msra.mxu3 %v2775_v33  ;;  %1677 = vmatpush.bf16.msra.mxu1 %v2967_v56  ;;  %v1426_v33 = vpack.c.b16 %v1276_v30, %v1276_v30  ;;  %v2636_v30 = vld [vmem:[%s5239_s11 + $0x140] sm:$0xf0] }
 0x285   :  { %v1585_v44 = vsel %vm1577_vm10, %v1426_v33, 0  ;;  %v2778_v33 = vld [vmem:[%s5239_s11 + $0x248] sm:$0xf] }
 0x287   :  { %1665 = vmatpush.bf16.msra.mxu3 %v2751_v45  ;;  %1678 = vmatpush.bf16.msra.mxu1 %v2943_v0 }
 0x28b   :  { %1666 = vmatpush.bf16.msra.mxu3 %v2727_v58  ;;  %1679 = vmatpush.bf16.msra.mxu1 %v2919_v9  ;;  %v3162_v58 = vld [vmem:[%s5239_s11 + $0x10c] sm:$0xf0]  ;;  %v2994_v9 = vld [vmem:[%s5239_s11 + $0x3f8] sm:$0xf] }
 0x28c   :  { %v2611_v1 = vor.u32 %v3162_v58, %v2610_v55  ;;  %v2995_v17 = vor.u32 %v3258_v10, %v2994_v9  ;;  %v2755_v55 = vor.u32 %v3198_v48, %v2754_v47  ;;  %v2588_v58 = vld [vmem:[%s5239_s11 + $0xe0] sm:$0xf0]  ;;  %v1277_v9 = vunpack.c.h.b16 %v4213_v25  ;;  %v3261_v47 = vld [vmem:[%s5239_s11 + $0x42c] sm:$0xf] }
 0x28d   :  { %v3020_v48 = vld [vmem:[%s5239_s11 + $0x440] sm:$0xf0] }
 0x28f   :  { %1667 = vmatpush.bf16.msra.mxu3 %v2703_v3  ;;  %1680 = vmatpush.bf16.msra.mxu1 %v2895_v19  ;;  %v2586_v3 = vld [vmem:[%s5239_s11 + $0xc8] sm:$0xf]  ;;  %v2802_v19 = vld [vmem:[%s5239_s11 + $0x278] sm:$0xf] }
 0x290   :  { %v2587_v12 = vor.u32 %v3156_v6, %v2586_v3  ;;  %v3234_v3 = vld [vmem:[%s5239_s11 + $0x34c] sm:$0xf0] }
 0x293   :  { %1668 = vmatpush.bf16.msra.mxu3 %v2679_v13  ;;  %1681 = vmatpush.bf16.msra.mxu1 %v2871_v22  ;;  %v2827_v13 = vor.u32 %v3216_v8, %v2826_v7  ;;  %v3252_v22 = vld [vmem:[%s5239_s11 + $0x3dc] sm:$0xf0]  ;;  %v3147_v7 = vld [vmem:[%s5239_s11 + $0x9c] sm:$0xf]  ;;  %v2564_v8 = vld [vmem:[%s5239_s11 + $0xb0] sm:$0xf0] }
 0x294   :  { %v2971_v31 = vor.u32 %v3252_v22, %v2970_v21  ;;  %v2567_v25 = vor.u32 %v3147_v7, %v2564_v8  ;;  %v2540_v21 = vld [vmem:[%s5239_s11 + $0x80] sm:$0xf0]  ;;  %v1427_v22 = vpack.c.b16 %v1277_v9, %v1277_v9  ;;  %v3189_v7 = vld [vmem:[%s5239_s11 + $0x1ec] sm:$0xf] }
 0x295   :  { %v2732_v9 = vld [vmem:[%s5239_s11 + $0x200] sm:$0xf0] }
 0x2d2   :  { %v332_v26 = vpop.f32.mrf.mxu1 }
 0x2d3   :  { %v352_v27 = vpop.f32.mrf.mxu0  ;;  %v4222_v41 = vpack.c.bf16 %v332_v26, %v332_v26  ;;  %v2803_v26 = vor.u32 %v3210_v20, %v2802_v19  ;;  %v3141_v20 = vld [vmem:[%s5239_s11 + $0x6c] sm:$0xf] }
 0x2d4   :  { %v4225_v45 = vpack.c.bf16 %v352_v27, %v352_v27  ;;  %v2538_v27 = vld [vmem:[%s5239_s11 + $0x68] sm:$0xf] }
 0x2d8   :  { %v312_v34 = vpop.f32.mrf.mxu3 }
 0x2d9   :  { %v372_v38 = vpop.f32.mrf.mxu2  ;;  %v4265_v61 = vpack.c.bf16 %v312_v34, %v312_v34  ;;  %v3204_v34 = vld [vmem:[%s5239_s11 + $0x25c] sm:$0xf0] }
 0x2da   :  { %v415_v39 = vpop.f32.mrf.mxu1 }
 0x2db   :  { %vm468_vm11 = vcmp.eq.f32.partialorder %v415_v39, %v464_v32  ;;  %v435_v42 = vpop.f32.mrf.mxu0  ;;  %v3144_v32 = vld [vmem:[%s5239_s11 + $0x7c] sm:$0xf0]  ;;  %v2779_v39 = vor.u32 %v3204_v34, %v2778_v33  ;;  %v2543_v33 = vor.u32 %v3141_v20, %v2540_v21  ;;  %v2708_v21 = vld [vmem:[%s5239_s11 + $0x1d0] sm:$0xf0] }
 0x2dc   :  { %vm4227_vm12 = vmpackc.low %vm468_vm11, %vm468_vm11  ;;  %vm469_vm13 = vcmp.eq.f32.partialorder %v435_v42, %v465_v35  ;;  %v2639_v35 = vor.u32 %v3165_v29, %v2636_v30  ;;  %v3159_v42 = vld [vmem:[%s5239_s11 + $0xfc] sm:$0xf]  ;;  %v2804_v30 = vld [vmem:[%s5239_s11 + $0x290] sm:$0xf0] }
 0x2dd   :  { %vm4237_vm14 = vmpackc.low %vm469_vm13, %vm469_vm13  ;;  %3061 = vmatmul.msk.bf16.vlgmr.msrb.gmra.mxu1 %vm4227_vm12, %v4222_v41 }
 0x2de   :  { %3064 = vmatmul.msk.bf16.vlgmr.msrb.gmra.mxu0 %vm4237_vm14, %v4225_v45  ;;  %1746 = vmatpush.bf16.msrb.mxu1 %v1585_v44  ;;  %v3138_v44 = vld [vmem:[%s5239_s11 + $0x4c] sm:$0xf0] }
 0x2df   :  { %1700 = vmatpush.bf16.msrb.mxu0 %v2659_v43  ;;  %v2612_v43 = vld [vmem:[%s5239_s11 + $0x110] sm:$0xf0] }
 0x2e0   :  { %v395_v56 = vpop.f32.mrf.mxu3  ;;  %v2615_v51 = vor.u32 %v3159_v42, %v2612_v43  ;;  %v2516_v42 = vld [vmem:[%s5239_s11 + $0x50] sm:$0xf0]  ;;  %v3201_v43 = vld [vmem:[%s5239_s11 + $0x24c] sm:$0xf] }
 0x2e1   :  { %vm467_vm15 = vcmp.eq.f32.partialorder %v395_v56, %v463_v50  ;;  %v455_v62 = vpop.f32.mrf.mxu2  ;;  %v2947_v50 = vor.u32 %v3246_v37, %v2946_v36  ;;  %v2490_v56 = vld [vmem:[%s5239_s11 + $0x8] sm:$0xf]  ;;  %v2666_v36 = vld [vmem:[%s5239_s11 + $0x160] sm:$0xf]  ;;  %v3175_v37 = vld [vmem:[%s5239_s11 + $0x174] sm:$0xf0] }
 0x2e2   :  { %vm4273_vm0 = vmpackc.low %vm467_vm15, %vm467_vm15  ;;  %vm470_vm2 = vcmp.eq.f32.partialorder %v455_v62, %v466_v53  ;;  %v3240_v53 = vld [vmem:[%s5239_s11 + $0x37c] sm:$0xf0] }
 0x2e3   :  { %v474_v0 = vsel %vm470_vm2, %v372_v38, 0.0  ;;  %1701 = vmatpush.bf16.msrb.mxu0 %v2635_v54  ;;  %3058 = vmatmul.msk.bf16.vlgmr.msrb.gmra.mxu3 %vm4273_vm0, %v4265_v61  ;;  %v2539_v38 = vor.u32 %v3144_v32, %v2538_v27  ;;  %v2515_v54 = vor.u32 %v3138_v44, %v2514_v40  ;;  %v3192_v62 = vld [vmem:[%s5239_s11 + $0x1fc] sm:$0xf0]  ;;  %v2923_v11 = vor.u32 %v3240_v53, %v2922_v52  ;;  %v3207_v27 = vld [vmem:[%s5239_s11 + $0x27c] sm:$0xf] }
 0x2e4   :  { %v4283_v4 = vpack.c.bf16 %v474_v0, %v474_v0  ;;  %1726 = vmatpush.bf16.msrb.mxu3 %v3043_v57  ;;  %v3153_v57 = vld [vmem:[%s5239_s11 + $0xcc] sm:$0xf]  ;;  %v2852_v0 = vld [vmem:[%s5239_s11 + $0x2f0] sm:$0xf0]  ;;  %v2731_v6 = vor.u32 %v3192_v62, %v2730_v60  ;;  %v3135_v40 = vld [vmem:[%s5239_s11 + $0x3c] sm:$0xf] }
 0x2e5   :  { %v2855_v10 = vor.u32 %v3219_v63, %v2852_v0  ;;  %v3044_v32 = vld [vmem:[%s5239_s11 + $0x470] sm:$0xf0]  ;;  %v2780_v44 = vld [vmem:[%s5239_s11 + $0x260] sm:$0xf0]  ;;  %v2642_v52 = vld [vmem:[%s5239_s11 + $0x130] sm:$0xf] }
 0x2e6   :  { %3065 = vmatmul.msk.bf16.vlgmr.msrb.gmra.mxu2 %vm182_vm6, %v4283_v4  ;;  %v3169_v53 = vld [vmem:[%s5239_s11 + $0x144] sm:$0xf0]  ;;  %v3255_v60 = vld [vmem:[%s5239_s11 + $0x3fc] sm:$0xf]  ;;  %v2996_v62 = vld [vmem:[%s5239_s11 + $0x410] sm:$0xf0] }
 0x2e7   :  { %1702 = vmatpush.bf16.msrb.mxu0 %v2611_v1  ;;  %1713 = vmatpush.bf16.msrb.mxu2 %v2851_v2  ;;  %v2591_v1 = vor.u32 %v3153_v57, %v2588_v58  ;;  %v2898_v2 = vld [vmem:[%s5239_s11 + $0x338] sm:$0xf]  ;;  %v2492_v57 = vld [vmem:[%s5239_s11 + $0x20] sm:$0xf0]  ;;  %v3195_v58 = vld [vmem:[%s5239_s11 + $0x21c] sm:$0xf] }
 0x2e8   :  { %1727 = vmatpush.bf16.msrb.mxu3 %v3019_v5  ;;  %v2491_v5 = vor.u32 %v3132_v59, %v2490_v56  ;;  %v2899_v14 = vor.u32 %v3234_v3, %v2898_v2  ;;  %v3129_v56 = vld [vmem:[%s5239_s11 + $0xc] sm:$0xf]  ;;  %v2756_v59 = vld [vmem:[%s5239_s11 + $0x230] sm:$0xf0]  ;;  %v2858_v63 = vld [vmem:[%s5239_s11 + $0x2e0] sm:$0xf] }
 0x2e9   :  { %v3223_v0 = vld [vmem:[%s5239_s11 + $0x2f4] sm:$0xf0]  ;;  %v2618_v2 = vld [vmem:[%s5239_s11 + $0x100] sm:$0xf] }
 0x2ea   :  { %v3163_v3 = vld [vmem:[%s5239_s11 + $0x114] sm:$0xf0]  ;;  %v2859_v8 = vor.u32 %v3223_v0, %v2858_v63 }
 0x2eb   :  { %1703 = vmatpush.bf16.msrb.mxu0 %v2587_v12  ;;  %1714 = vmatpush.bf16.msrb.mxu2 %v2827_v13  ;;  %v2706_v12 = vld [vmem:[%s5239_s11 + $0x1b8] sm:$0xf]  ;;  %v3186_v13 = vld [vmem:[%s5239_s11 + $0x1cc] sm:$0xf0] }
 0x2ec   :  { %1728 = vmatpush.bf16.msrb.mxu3 %v2995_v17  ;;  %v2874_v17 = vld [vmem:[%s5239_s11 + $0x308] sm:$0xf]  ;;  %v2707_v19 = vor.u32 %v3186_v13, %v2706_v12  ;;  %v2972_v12 = vld [vmem:[%s5239_s11 + $0x3e0] sm:$0xf0]  ;;  %v2619_v13 = vor.u32 %v3163_v3, %v2618_v2  ;;  %v3225_v3 = vld [vmem:[%s5239_s11 + $0x30c] sm:$0xf] }
 0x2ed   :  { %3074 = vmatmul.msk.bf16.vlgmr.msra.gmra.mxu1 %vm4237_vm14, %v4225_v45  ;;  %v2875_v29 = vor.u32 %v3228_v18, %v2874_v17  ;;  %v2735_v17 = vor.u32 %v3189_v7, %v2732_v9  ;;  %v3002_v9 = vld [vmem:[%s5239_s11 + $0x400] sm:$0xf] }
 0x2ee   :  { %3075 = vmatmul.msk.bf16.vlgmr.msra.gmra.mxu0 %vm182_vm6, %v4283_v4  ;;  %1752 = vmatpush.bf16.msra.mxu1 %v2663_v23  ;;  %v2831_v23 = vor.u32 %v3213_v15, %v2828_v16  ;;  %v3217_v15 = vld [vmem:[%s5239_s11 + $0x2c4] sm:$0xf0]  ;;  %v2594_v16 = vld [vmem:[%s5239_s11 + $0xd0] sm:$0xf] }
 0x2ef   :  { %1704 = vmatpush.bf16.msrb.mxu0 %v2563_v24  ;;  %1715 = vmatpush.bf16.msrb.mxu2 %v2803_v26  ;;  %v2682_v24 = vld [vmem:[%s5239_s11 + $0x188] sm:$0xf]  ;;  %v3180_v26 = vld [vmem:[%s5239_s11 + $0x19c] sm:$0xf0] }
 0x2f0   :  { %1729 = vmatpush.bf16.msrb.mxu3 %v2971_v31  ;;  %v3267_v31 = vld [vmem:[%s5239_s11 + $0x45c] sm:$0xf]  ;;  %v2683_v34 = vor.u32 %v3180_v26, %v2682_v24  ;;  %v2810_v26 = vld [vmem:[%s5239_s11 + $0x280] sm:$0xf] }
 0x2f2   :  { %1753 = vmatpush.bf16.msra.mxu1 %v2639_v35  ;;  %v1588_v35 = vsel %vm1577_vm10, %v1427_v22, 0  ;;  %v3243_v22 = vld [vmem:[%s5239_s11 + $0x39c] sm:$0xf] }
 0x2f3   :  { %1705 = vmatpush.bf16.msrb.mxu0 %v2539_v38  ;;  %1716 = vmatpush.bf16.msrb.mxu2 %v2779_v39  ;;  %v2807_v38 = vor.u32 %v3207_v27, %v2804_v30  ;;  %v3047_v39 = vor.u32 %v3267_v31, %v3044_v32  ;;  %v3211_v27 = vld [vmem:[%s5239_s11 + $0x294] sm:$0xf0] }
 0x2f4   :  { %3071 = vmatmul.msk.bf16.vlgmr.msra.gmra.mxu3 %vm4227_vm12, %v4222_v41  ;;  %v3151_v30 = vld [vmem:[%s5239_s11 + $0xb4] sm:$0xf0] }
 0x2f5   :  { %1730 = vmatpush.bf16.msrb.mxu3 %v2947_v50  ;;  %v2667_v50 = vor.u32 %v3175_v37, %v2666_v36  ;;  %v3237_v36 = vld [vmem:[%s5239_s11 + $0x36c] sm:$0xf]  ;;  %v2924_v37 = vld [vmem:[%s5239_s11 + $0x380] sm:$0xf0] }
 0x2f6   :  { %3068 = vmatmul.msk.bf16.vlgmr.msra.gmra.mxu2 %vm4273_vm0, %v4265_v61  ;;  %1754 = vmatpush.bf16.msra.mxu1 %v2615_v51  ;;  %v2519_v51 = vor.u32 %v3135_v40, %v2516_v42  ;;  %v3205_v40 = vld [vmem:[%s5239_s11 + $0x264] sm:$0xf0]  ;;  %v3050_v42 = vld [vmem:[%s5239_s11 + $0x460] sm:$0xf] }
 0x2f7   :  { %1706 = vmatpush.bf16.msrb.mxu0 %v2515_v54  ;;  %1717 = vmatpush.bf16.msrb.mxu2 %v2755_v55  ;;  %v2783_v54 = vor.u32 %v3201_v43, %v2780_v44  ;;  %v3023_v55 = vor.u32 %v3261_v47, %v3020_v48  ;;  %v3271_v43 = vld [vmem:[%s5239_s11 + $0x474] sm:$0xf0]  ;;  %v2546_v44 = vld [vmem:[%s5239_s11 + $0x70] sm:$0xf]  ;;  %v3145_v47 = vld [vmem:[%s5239_s11 + $0x84] sm:$0xf0] }
 0x2f9   :  { %1731 = vmatpush.bf16.msrb.mxu3 %v2923_v11  ;;  %v2643_v11 = vor.u32 %v3169_v53, %v2642_v52  ;;  %v3051_v53 = vor.u32 %v3271_v43, %v3050_v42  ;;  %v3247_v42 = vld [vmem:[%s5239_s11 + $0x3b4] sm:$0xf0]  ;;  %v3268_v43 = vld [vmem:[%s5239_s11 + $0x464] sm:$0xf] }
 0x2fa   :  { %1755 = vmatpush.bf16.msra.mxu1 %v2591_v1  ;;  %v2495_v1 = vor.u32 %v3129_v56, %v2492_v57  ;;  %v2762_v56 = vld [vmem:[%s5239_s11 + $0x220] sm:$0xf]  ;;  %v2547_v57 = vor.u32 %v3145_v47, %v2546_v44  ;;  %v3052_v44 = vld [vmem:[%s5239_s11 + $0x478] sm:$0xf0] }
 0x2fb   :  { %1707 = vmatpush.bf16.msrb.mxu0 %v2491_v5  ;;  %1718 = vmatpush.bf16.msrb.mxu2 %v2731_v6  ;;  %v2759_v5 = vor.u32 %v3195_v58, %v2756_v59  ;;  %v2999_v6 = vor.u32 %v3255_v60, %v2996_v62  ;;  %v3199_v58 = vld [vmem:[%s5239_s11 + $0x234] sm:$0xf0]  ;;  %v3026_v59 = vld [vmem:[%s5239_s11 + $0x430] sm:$0xf]  ;;  %v3265_v60 = vld [vmem:[%s5239_s11 + $0x444] sm:$0xf0] }
 0x2fc   :  { %v2522_v62 = vld [vmem:[%s5239_s11 + $0x40] sm:$0xf]  ;;  %v3027_v2 = vor.u32 %v3265_v60, %v3026_v59  ;;  %v3241_v59 = vld [vmem:[%s5239_s11 + $0x384] sm:$0xf0]  ;;  %v3262_v60 = vld [vmem:[%s5239_s11 + $0x434] sm:$0xf] }
 0x2fd   :  { %1732 = vmatpush.bf16.msrb.mxu3 %v2899_v14  ;;  %3085 = vmatmul.msk.bf16.vlgmr.msrb.gmra.mxu1 %vm182_vm6, %v4283_v4  ;;  %v2834_v14 = vld [vmem:[%s5239_s11 + $0x2b0] sm:$0xf] }
 0x2fe   :  { %3078 = vmatmul.msk.bf16.vlgmr.msrb.gmra.mxu0 %vm4273_vm0, %v4265_v61  ;;  %1756 = vmatpush.bf16.msra.mxu1 %v2567_v25  ;;  %v3157_v25 = vld [vmem:[%s5239_s11 + $0xe4] sm:$0xf0]  ;;  %v2835_v20 = vor.u32 %v3217_v15, %v2834_v14 }
 0x2ff   :  { %1765 = vmatpush.bf16.msra.mxu0 %v2855_v10  ;;  %1719 = vmatpush.bf16.msrb.mxu2 %v2707_v19  ;;  %v3249_v10 = vld [vmem:[%s5239_s11 + $0x3cc] sm:$0xf]  ;;  %v3183_v19 = vld [vmem:[%s5239_s11 + $0x1bc] sm:$0xf]  ;;  %v2595_v24 = vor.u32 %v3157_v25, %v2594_v16  ;;  %v3220_v16 = vld [vmem:[%s5239_s11 + $0x2e4] sm:$0xf] }
 0x300   :  { %v2975_v18 = vor.u32 %v3249_v10, %v2972_v12  ;;  %v2711_v31 = vor.u32 %v3183_v19, %v2708_v21  ;;  %v3259_v10 = vld [vmem:[%s5239_s11 + $0x414] sm:$0xf0]  ;;  %v2498_v12 = vld [vmem:[%s5239_s11 + $0x10] sm:$0xf]  ;;  %v2860_v25 = vld [vmem:[%s5239_s11 + $0x2f8] sm:$0xf0] }
 0x301   :  { %1733 = vmatpush.bf16.msrb.mxu3 %v2875_v29  ;;  %v2570_v29 = vld [vmem:[%s5239_s11 + $0xa0] sm:$0xf]  ;;  %v3172_v19 = vld [vmem:[%s5239_s11 + $0x164] sm:$0xf] }
 0x302   :  { %1757 = vmatpush.bf16.msra.mxu1 %v2543_v33  ;;  %v3177_v33 = vld [vmem:[%s5239_s11 + $0x18c] sm:$0xf] }
 0x303   :  { %1766 = vmatpush.bf16.msra.mxu0 %v2831_v23  ;;  %1720 = vmatpush.bf16.msrb.mxu2 %v2683_v34  ;;  %v2948_v23 = vld [vmem:[%s5239_s11 + $0x3b0] sm:$0xf0]  ;;  %v2684_v34 = vld [vmem:[%s5239_s11 + $0x1a0] sm:$0xf0] }
 0x304   :  { %3084 = vmatmul.msk.bf16.vlgmr.msrb.gmra.mxu3 %vm4237_vm14, %v4225_v45  ;;  %v2951_v32 = vor.u32 %v3243_v22, %v2948_v23  ;;  %v2687_v48 = vor.u32 %v3177_v33, %v2684_v34  ;;  %v2714_v22 = vld [vmem:[%s5239_s11 + $0x1c0] sm:$0xf]  ;;  %v3187_v23 = vld [vmem:[%s5239_s11 + $0x1d4] sm:$0xf0]  ;;  %v3166_v34 = vld [vmem:[%s5239_s11 + $0x134] sm:$0xf] }
 0x305   :  { %1798 = vmatpush.bf16.msra.mxu3 %v1588_v35  ;;  %v2811_v35 = vor.u32 %v3211_v27, %v2810_v26  ;;  %v2978_v27 = vld [vmem:[%s5239_s11 + $0x3d0] sm:$0xf]  ;;  %v2715_v33 = vor.u32 %v3187_v23, %v2714_v22  ;;  %v2980_v22 = vld [vmem:[%s5239_s11 + $0x3e8] sm:$0xf0] }
 0x306   :  { %3081 = vmatmul.msk.bf16.vlgmr.msrb.gmra.mxu2 %vm4227_vm12, %v4222_v41  ;;  %1758 = vmatpush.bf16.msra.mxu1 %v2519_v51  ;;  %v4620_v51 = vld [vmem:[%s5239_s11 + $0x490] sm:$0xff] }
 0x307   :  { %1767 = vmatpush.bf16.msra.mxu0 %v2807_v38  ;;  %1778 = vmatpush.bf16.msra.mxu2 %v3047_v39  ;;  %v2786_v38 = vld [vmem:[%s5239_s11 + $0x250] sm:$0xf]  ;;  %v2571_v39 = vor.u32 %v3151_v30, %v2570_v29  ;;  %v1278_v63 = vunpack.c.l.b16 %v4620_v51  ;;  %v3253_v29 = vld [vmem:[%s5239_s11 + $0x3e4] sm:$0xf0] }
 0x308   :  { %v2787_v52 = vor.u32 %v3205_v40, %v2786_v38  ;;  %v3181_v38 = vld [vmem:[%s5239_s11 + $0x1a4] sm:$0xf0] }
 0x309   :  { %1804 = vmatpush.bf16.msrb.mxu3 %v2667_v50  ;;  %v2927_v50 = vor.u32 %v3237_v36, %v2924_v37  ;;  %v1428_v14 = vpack.c.b16 %v1278_v63, %v1278_v63  ;;  %v2979_v36 = vor.u32 %v3253_v29, %v2978_v27  ;;  %v2690_v37 = vld [vmem:[%s5239_s11 + $0x190] sm:$0xf]  ;;  %v3202_v63 = vld [vmem:[%s5239_s11 + $0x254] sm:$0xf] }
 0x30a   :  { %1759 = vmatpush.bf16.msra.mxu1 %v2495_v1  ;;  %v2763_v1 = vor.u32 %v3199_v58, %v2762_v56  ;;  %v3055_v56 = vor.u32 %v3268_v43, %v3052_v44  ;;  %v3142_v29 = vld [vmem:[%s5239_s11 + $0x74] sm:$0xf] }
 0x30b   :  { %1768 = vmatpush.bf16.msra.mxu0 %v2783_v54  ;;  %1779 = vmatpush.bf16.msra.mxu2 %v3023_v55  ;;  %v3231_v54 = vld [vmem:[%s5239_s11 + $0x33c] sm:$0xf]  ;;  %v2900_v55 = vld [vmem:[%s5239_s11 + $0x350] sm:$0xf0]  ;;  %v1591_v26 = vsel %vm1577_vm10, %v1428_v14, 0 }
 0x30c   :  { %v2903_v0 = vor.u32 %v3231_v54, %v2900_v55  ;;  %v2620_v54 = vld [vmem:[%s5239_s11 + $0x118] sm:$0xf0] }
 0x30d   :  { %1805 = vmatpush.bf16.msrb.mxu3 %v2643_v11  ;;  %3088 = vmatmul.msk.bf16.vlgmr.msra.gmra.mxu1 %vm4273_vm0, %v4265_v61  ;;  %v3139_v11 = vld [vmem:[%s5239_s11 + $0x54] sm:$0xf0]  ;;  %v2764_v14 = vld [vmem:[%s5239_s11 + $0x238] sm:$0xf0] }
 0x30e   :  { %1817 = vmatpush.bf16.msrb.mxu1 %v2859_v8  ;;  %v2523_v7 = vor.u32 %v3139_v11, %v2522_v62  ;;  %v3193_v8 = vld [vmem:[%s5239_s11 + $0x204] sm:$0xf0]  ;;  %v3028_v62 = vld [vmem:[%s5239_s11 + $0x448] sm:$0xf0] }
 0x30f   :  { %1769 = vmatpush.bf16.msra.mxu0 %v2759_v5  ;;  %1780 = vmatpush.bf16.msra.mxu2 %v2999_v6  ;;  %v2876_v5 = vld [vmem:[%s5239_s11 + $0x320] sm:$0xf0]  ;;  %v2738_v6 = vld [vmem:[%s5239_s11 + $0x1f0] sm:$0xf] }
 0x310   :  { %v2879_v15 = vor.u32 %v3225_v3, %v2876_v5  ;;  %v3031_v5 = vor.u32 %v3262_v60, %v3028_v62  ;;  %v3489_v60 = vld [vmem:[%s5241_s13 + $0x38] sm:$0xff]  }
 0x311   :  { %1806 = vmatpush.bf16.msrb.mxu3 %v2619_v13  ;;  %v3133_v13 = vld [vmem:[%s5239_s11 + $0x24] sm:$0xf0] }
 0x312   :  { %1818 = vmatpush.bf16.msrb.mxu1 %v2835_v20  ;;  %v2668_v20 = vld [vmem:[%s5239_s11 + $0x178] sm:$0xf0]  ;;  %v2499_v21 = vor.u32 %v3133_v13, %v2498_v12  ;;  %v3196_v13 = vld [vmem:[%s5239_s11 + $0x224] sm:$0xf] }
 0x313   :  { %1770 = vmatpush.bf16.msra.mxu0 %v2735_v17  ;;  %1781 = vmatpush.bf16.msra.mxu2 %v2975_v18  ;;  %v2739_v17 = vor.u32 %v3193_v8, %v2738_v6  ;;  %v3003_v18 = vor.u32 %v3259_v10, %v3002_v9  ;;  %v2671_v30 = vor.u32 %v3172_v19, %v2668_v20  ;;  %v2906_v6 = vld [vmem:[%s5239_s11 + $0x340] sm:$0xf]  ;;  %v3235_v8 = vld [vmem:[%s5239_s11 + $0x354] sm:$0xf0]  ;;  %v3256_v9 = vld [vmem:[%s5239_s11 + $0x404] sm:$0xf] }
 0x314   :  { %3095 = vmatmul.msk.bf16.vlgmr.msra.gmra.mxu3 %vm182_vm6, %v4283_v4  ;;  %v3004_v10 = vld [vmem:[%s5239_s11 + $0x418] sm:$0xf0]  ;;  %v2882_v19 = vld [vmem:[%s5239_s11 + $0x310] sm:$0xf]  ;;  %v2767_v20 = vor.u32 %v3196_v13, %v2764_v14 }
 0x315   :  { %1807 = vmatpush.bf16.msrb.mxu3 %v2595_v24  ;;  %v2863_v24 = vor.u32 %v3220_v16, %v2860_v25  ;;  %v3148_v16 = vld [vmem:[%s5239_s11 + $0xa4] sm:$0xf]  ;;  %v2572_v25 = vld [vmem:[%s5239_s11 + $0xb8] sm:$0xf0]  ;;  %v3484_v13 = vld [vmem:[%s5241_s13 + $0x10] sm:$0xff]  }
 0x316   :  { %1819 = vmatpush.bf16.msrb.mxu1 %v2811_v35  ;;  %v2644_v35 = vld [vmem:[%s5239_s11 + $0x148] sm:$0xf0]  ;;  %v2575_v23 = vor.u32 %v3148_v16, %v2572_v25  ;;  %v3299_v14 = vunpack.c.h.bf16 %v3484_v13  ;;  %v3496_v16 = vld [vmem:[%s5241_s13 + $0x70] sm:$0xff]   ;;  %v3298_v25 = vunpack.c.l.bf16 %v3484_v13 }
 0x317   :  { %1771 = vmatpush.bf16.msra.mxu0 %v2711_v31  ;;  %1782 = vmatpush.bf16.msra.mxu2 %v2951_v32  ;;  %v3214_v31 = vld [vmem:[%s5239_s11 + $0x2b4] sm:$0xf]  ;;  %v2836_v32 = vld [vmem:[%s5239_s11 + $0x2c8] sm:$0xf0]  ;;  %v2647_v47 = vor.u32 %v3166_v34, %v2644_v35  ;;  %v3244_v34 = vld [vmem:[%s5239_s11 + $0x3a4] sm:$0xf] }
 0x318   :  { %v2839_v40 = vor.u32 %v3214_v31, %v2836_v32  ;;  %v2956_v35 = vld [vmem:[%s5239_s11 + $0x3b8] sm:$0xf0] }
 0x319   :  { %1808 = vmatpush.bf16.msrb.mxu3 %v2571_v39  ;;  %v2954_v39 = vld [vmem:[%s5239_s11 + $0x3a0] sm:$0xf]  ;;  %v2959_v43 = vor.u32 %v3244_v34, %v2956_v35  ;;  %v3505_v34 = vld [vmem:[%s5241_s13 + $0xb8] sm:$0xff]  }
 0x31a   :  { %1820 = vmatpush.bf16.msrb.mxu1 %v2787_v52  ;;  %v2691_v52 = vor.u32 %v3181_v38, %v2690_v37  ;;  %v2955_v55 = vor.u32 %v3247_v42, %v2954_v39  ;;  %v3184_v37 = vld [vmem:[%s5239_s11 + $0x1c4] sm:$0xf]  ;;  %v2716_v38 = vld [vmem:[%s5239_s11 + $0x1d8] sm:$0xf0] }
 0x31b   :  { %1772 = vmatpush.bf16.msra.mxu0 %v2687_v48  ;;  %1783 = vmatpush.bf16.msra.mxu2 %v2927_v50  ;;  %v3208_v48 = vld [vmem:[%s5239_s11 + $0x284] sm:$0xf]  ;;  %v2812_v50 = vld [vmem:[%s5239_s11 + $0x298] sm:$0xf0]  ;;  %v2719_v44 = vor.u32 %v3184_v37, %v2716_v38 }
 0x31c   :  { %v2815_v58 = vor.u32 %v3208_v48, %v2812_v50  ;;  %v2524_v42 = vld [vmem:[%s5239_s11 + $0x58] sm:$0xf0]  ;;  %v2932_v48 = vld [vmem:[%s5239_s11 + $0x388] sm:$0xf0] }
 0x31d   :  { %1809 = vmatpush.bf16.msrb.mxu3 %v2547_v57  ;;  %v2930_v57 = vld [vmem:[%s5239_s11 + $0x370] sm:$0xf]  ;;  %v3493_v38 = vld [vmem:[%s5241_s13 + $0x58] sm:$0xff]  }
 0x31e   :  { %3091 = vmatmul.msk.bf16.vlgmr.msra.gmra.mxu0 %vm4227_vm12, %v4222_v41  ;;  %1821 = vmatpush.bf16.msrb.mxu1 %v2763_v1  ;;  %v3154_v1 = vld [vmem:[%s5239_s11 + $0xd4] sm:$0xf]  ;;  %v2931_v3 = vor.u32 %v3241_v59, %v2930_v57  ;;  %v2908_v59 = vld [vmem:[%s5239_s11 + $0x358] sm:$0xf0] }
 0x31f   :  { %1830 = vmatpush.bf16.msrb.mxu0 %v3051_v53  ;;  %1784 = vmatpush.bf16.msra.mxu2 %v2903_v0  ;;  %v3160_v53 = vld [vmem:[%s5239_s11 + $0x104] sm:$0xf]  ;;  %v2788_v0 = vld [vmem:[%s5239_s11 + $0x268] sm:$0xf0] }
 0x320   :  { %v2623_v11 = vor.u32 %v3160_v53, %v2620_v54  ;;  %v2692_v53 = vld [vmem:[%s5239_s11 + $0x1a8] sm:$0xf0]  ;;  %v3130_v54 = vld [vmem:[%s5239_s11 + $0x14] sm:$0xf] }
 0x321   :  { %1810 = vmatpush.bf16.msrb.mxu3 %v2523_v7  ;;  %v2791_v7 = vor.u32 %v3202_v63, %v2788_v0  ;;  %v3226_v0 = vld [vmem:[%s5239_s11 + $0x314] sm:$0xf] }
 0x322   :  { %1822 = vmatpush.bf16.msrb.mxu1 %v2739_v17  ;;  %v2907_v17 = vor.u32 %v3235_v8, %v2906_v6  ;;  %v3307_v8 = vunpack.c.h.bf16 %v3486_v28 }
 0x323   :  { %1831 = vmatpush.bf16.msrb.mxu0 %v3027_v2  ;;  %1785 = vmatpush.bf16.msra.mxu2 %v2879_v15  ;;  %v2596_v2 = vld [vmem:[%s5239_s11 + $0xe8] sm:$0xf0]  ;;  %v1279_v15 = vunpack.c.h.b16 %v4620_v51  ;;  %v3229_v51 = vld [vmem:[%s5239_s11 + $0x324] sm:$0xf0] }
 0x324   :  { %v2599_v12 = vor.u32 %v3154_v1, %v2596_v2  ;;  %v2883_v31 = vor.u32 %v3229_v51, %v2882_v19  ;;  %v2884_v1 = vld [vmem:[%s5239_s11 + $0x328] sm:$0xf0] }
 0x325   :  { %1811 = vmatpush.bf16.msrb.mxu3 %v2499_v21  ;;  %v3250_v21 = vld [vmem:[%s5239_s11 + $0x3d4] sm:$0xf]  ;;  %v1429_v27 = vpack.c.b16 %v1279_v15, %v1279_v15  ;;  %v2887_v2 = vor.u32 %v3226_v0, %v2884_v1 }
 0x326   :  { %3094 = vmatmul.msk.bf16.vlgmr.msra.gmra.mxu2 %vm4237_vm14, %v4225_v45  ;;  %1823 = vmatpush.bf16.msrb.mxu1 %v2715_v33  ;;  %v2983_v32 = vor.u32 %v3250_v21, %v2980_v22  ;;  %v3495_v21 = vld [vmem:[%s5241_s13 + $0x68] sm:$0xff]  }
 0x327   :  { %1832 = vmatpush.bf16.msrb.mxu0 %v3003_v18  ;;  %1850 = vmatpush.bf16.msrb.mxu2 %v1591_v26  ;;  %v3007_v18 = vor.u32 %v3256_v9, %v3004_v10  ;;  %v2740_v26 = vld [vmem:[%s5239_s11 + $0x208] sm:$0xf0]  ;;  %v1594_v39 = vsel %vm1577_vm10, %v1429_v27, 0  ;;  %v3306_v9 = vunpack.c.l.bf16 %v3486_v28  ;;  %v3302_v10 = vunpack.c.l.bf16 %v3485_v49 }
 0x328   :  { %3098 = vmatmul.msk.bf16.vlgmr.msrb.gmra.mxu3 %vm4273_vm0, %v4265_v61 }
 0x329   :  { %1869 = vmatpush.bf16.msra.mxu3 %v2863_v24  ;;  %v3190_v24 = vld [vmem:[%s5239_s11 + $0x1f4] sm:$0xf] }
 0x32a   :  { %1824 = vmatpush.bf16.msrb.mxu1 %v2691_v52  ;;  %v2743_v33 = vor.u32 %v3190_v24, %v2740_v26  ;;  %v3178_v52 = vld [vmem:[%s5239_s11 + $0x194] sm:$0xf]  ;;  %v3343_v24 = vunpack.c.h.bf16 %v3495_v21  ;;  %v3289_v26 = vld [vmem:[%s5241_s13] sm:$0xff]  }
 0x32b   :  { %1856 = vmatpush.bf16.msra.mxu2 %v2671_v30  ;;  %1833 = vmatpush.bf16.msrb.mxu0 %v2979_v36  ;;  %v2548_v30 = vld [vmem:[%s5239_s11 + $0x88] sm:$0xf0]  ;;  %v2695_v57 = vor.u32 %v3178_v52, %v2692_v53  ;;  %v3291_v27 = vunpack.c.h.bf16 %v3289_v26  ;;  %v3492_v52 = vld [vmem:[%s5241_s13 + $0x50] sm:$0xff]  }
 0x32c   :  { %v2551_v36 = vor.u32 %v3142_v29, %v2548_v30  ;;  %v3342_v29 = vunpack.c.l.bf16 %v3495_v21  ;;  %v3494_v30 = vld [vmem:[%s5241_s13 + $0x60] sm:$0xff]  }
 0x32d   :  { %1870 = vmatpush.bf16.msra.mxu3 %v2839_v40  ;;  %3101 = vmatmul.msk.bf16.vlgmr.msrb.gmra.mxu1 %vm4227_vm12, %v4222_v41  ;;  %v3136_v40 = vld [vmem:[%s5239_s11 + $0x44] sm:$0xf]  ;;  %v3338_v35 = vunpack.c.l.bf16 %v3494_v30 }
 0x32e   :  { %1882 = vmatpush.bf16.msra.mxu1 %v3055_v56  ;;  %v2527_v50 = vor.u32 %v3136_v40, %v2524_v42  ;;  %v3335_v42 = vunpack.c.h.bf16 %v3493_v38 }
 0x32f   :  { %1857 = vmatpush.bf16.msra.mxu2 %v2647_v47  ;;  %1834 = vmatpush.bf16.msrb.mxu0 %v2955_v55  ;;  %v3238_v47 = vld [vmem:[%s5239_s11 + $0x374] sm:$0xf]  ;;  %v2500_v55 = vld [vmem:[%s5239_s11 + $0x28] sm:$0xf0] }
 0x330   :  { %v2935_v56 = vor.u32 %v3238_v47, %v2932_v48  ;;  %v2503_v62 = vor.u32 %v3130_v54, %v2500_v55  ;;  %v3504_v47 = vld [vmem:[%s5241_s13 + $0xb0] sm:$0xff]   ;;  %v3331_v54 = vunpack.c.h.bf16 %v3492_v52 }
 0x331   :  { %1871 = vmatpush.bf16.msra.mxu3 %v2815_v58  ;;  %v3232_v58 = vld [vmem:[%s5239_s11 + $0x344] sm:$0xf]  ;;  %v3379_v48 = vunpack.c.h.bf16 %v3504_v47  ;;  %v3378_v55 = vunpack.c.l.bf16 %v3504_v47 }
 0x332   :  { %1883 = vmatpush.bf16.msra.mxu1 %v3031_v5  ;;  %v2911_v63 = vor.u32 %v3232_v58, %v2908_v59  ;;  %v3488_v5 = vld [vmem:[%s5241_s13 + $0x30] sm:$0xff]   ;;  %v3330_v59 = vunpack.c.l.bf16 %v3492_v52 }
 0x333   :  { %1858 = vmatpush.bf16.msra.mxu2 %v2623_v11  ;;  %1835 = vmatpush.bf16.msrb.mxu0 %v2931_v3  ;;  %v3319_v11 = vunpack.c.h.bf16 %v3489_v60  ;;  %v3318_v3 = vunpack.c.l.bf16 %v3489_v60  ;;  %v3315_v6 = vunpack.c.h.bf16 %v3488_v5 }
 0x335   :  { %1872 = vmatpush.bf16.msra.mxu3 %v2791_v7  ;;  %v3314_v7 = vunpack.c.l.bf16 %v3488_v5 }
 0x336   :  { %1884 = vmatpush.bf16.msra.mxu1 %v3007_v18  ;;  %3105 = vmatmul.msk.bf16.vlgmr.msrb.gmra.mxu2 %vm182_vm6, %v4283_v4  ;;  %v3483_v18 = vld [vmem:[%s5241_s13 + $0x8] sm:$0xff]  }
 0x337   :  { %1859 = vmatpush.bf16.msra.mxu2 %v2599_v12  ;;  %1836 = vmatpush.bf16.msrb.mxu0 %v2907_v17  ;;  %v3347_v17 = vunpack.c.h.bf16 %v3496_v16  ;;  %v3295_v19 = vunpack.c.h.bf16 %v3483_v18 }
 0x339   :  { %1873 = vmatpush.bf16.msra.mxu3 %v2767_v20  ;;  %v3346_v20 = vunpack.c.l.bf16 %v3496_v16 }
 0x33a   :  { %1885 = vmatpush.bf16.msra.mxu1 %v2983_v32  ;;  %v3339_v32 = vunpack.c.h.bf16 %v3494_v30  ;;  %v3499_v30 = vld [vmem:[%s5241_s13 + $0x88] sm:$0xff]  }
 0x33b   :  { %1860 = vmatpush.bf16.msra.mxu2 %v2575_v23  ;;  %1837 = vmatpush.bf16.msrb.mxu0 %v2883_v31  ;;  %v3294_v23 = vunpack.c.l.bf16 %v3483_v18  ;;  %v3290_v31 = vunpack.c.l.bf16 %v3289_v26  ;;  %v3500_v18 = vld [vmem:[%s5241_s13 + $0x90] sm:$0xff]  }
 0x33c   :  { %v3362_v26 = vunpack.c.l.bf16 %v3500_v18 }
 0x33d   :  { %1874 = vmatpush.bf16.msra.mxu3 %v2743_v33  ;;  %v4929_v33 = vld [vmem:[%s5242_s12] sm:$0x3f] }
 0x33e   :  { %3104 = vmatmul.msk.bf16.vlgmr.msrb.gmra.mxu0 %vm4237_vm14, %v4225_v45  ;;  %1886 = vmatpush.bf16.msra.mxu1 %v2959_v43  ;;  %v827_v40 = vperm.slane %v4929_v33, 0  ;;  %v3382_v43 = vunpack.c.l.bf16 %v3505_v34 }
 0x33f   :  { %1902 = vmatpush.bf16.msra.mxu0 %v1594_v39  ;;  %1861 = vmatpush.bf16.msra.mxu2 %v2551_v36  ;;  %v3383_v36 = vunpack.c.h.bf16 %v3505_v34  ;;  %v3358_v34 = vunpack.c.l.bf16 %v3499_v30 }
 0x341   :  { %1875 = vmatpush.bf16.msra.mxu3 %v2719_v44  ;;  %v3334_v44 = vunpack.c.l.bf16 %v3493_v38 }
 0x342   :  { %1887 = vmatpush.bf16.msra.mxu1 %v2935_v56  ;;  %v3503_v56 = vld [vmem:[%s5241_s13 + $0xa8] sm:$0xff]  }
 0x343   :  { %1862 = vmatpush.bf16.msra.mxu2 %v2527_v50  ;;  %2004 = vmatpush.msrb.mxu0 %v3319_v11  ;;  %v3375_v60 = vunpack.c.h.bf16 %v3503_v56  ;;  %v3491_v11 = vld [vmem:[%s5241_s13 + $0x48] sm:$0xff]  }
 0x344   :  { %v3327_v1 = vunpack.c.h.bf16 %v3491_v11 }
 0x345   :  { %1876 = vmatpush.bf16.msra.mxu3 %v2695_v57  ;;  %2005 = vmatpush.msrb.mxu0 %v3318_v3  ;;  %v3502_v3 = vld [vmem:[%s5241_s13 + $0xa0] sm:$0xff]  }
 0x346   :  { %1888 = vmatpush.bf16.msra.mxu1 %v2911_v63 }
 0x347   :  { %1863 = vmatpush.bf16.msra.mxu2 %v2503_v62  ;;  %2006 = vmatpush.msrb.mxu0 %v3315_v6  ;;  %v3326_v6 = vunpack.c.l.bf16 %v3491_v11 }
 0x348   :  { %3111 = vmatmul.msk.bf16.vlgmr.msra.gmra.mxu3 %vm4227_vm12, %v4222_v41  ;;  %v3487_v41 = vld [vmem:[%s5241_s13 + $0x28] sm:$0xff]  }
 0x349   :  { %v3311_v46 = vunpack.c.h.bf16 %v3487_v41  ;;  %2007 = vmatpush.msrb.mxu0 %v3314_v7  ;;  %2044 = vmatpush.msrb.mxu3 %v3383_v36  ;;  %v3371_v7 = vunpack.c.h.bf16 %v3502_v3  ;;  %v3498_v36 = vld [vmem:[%s5241_s13 + $0x80] sm:$0xff]  }
 0x34a   :  { %3108 = vmatmul.msk.bf16.vlgmr.msra.gmra.mxu2 %vm4273_vm0, %v4265_v61  ;;  %1889 = vmatpush.bf16.msra.mxu1 %v2887_v2  ;;  %v3310_v61 = vunpack.c.l.bf16 %v3487_v41  ;;  %v3374_v2 = vunpack.c.l.bf16 %v3503_v56  ;;  %v3354_v56 = vunpack.c.l.bf16 %v3498_v36 }
 0x34b   :  { %2008 = vmatpush.msrb.mxu0 %v3311_v46  ;;  %2045 = vmatpush.msrb.mxu3 %v3382_v43  ;;  %v3490_v46 = vld [vmem:[%s5241_s13 + $0x40] sm:$0xff]   ;;  %v3355_v43 = vunpack.c.h.bf16 %v3498_v36 }
 0x34d   :  { %3114 = vmatmul.msk.bf16.vlgmr.msra.gmra.mxu1 %vm4237_vm14, %v4225_v45  ;;  %2009 = vmatpush.msrb.mxu0 %v3310_v61  ;;  %v3303_v45 = vunpack.c.h.bf16 %v3485_v49 }
 0x34e   :  { %3115 = vmatmul.msk.bf16.vlgmr.msra.gmra.mxu0 %vm182_vm6, %v4283_v4  ;;  %v3497_v4 = vld [vmem:[%s5241_s13 + $0x78] sm:$0xff]   ;;  %2046 = vmatpush.msrb.mxu3 %v3379_v48 }
 0x34f   :  { %2010 = vmatpush.msrb.mxu0 %v3307_v8  ;;  %v3351_v12 = vunpack.c.h.bf16 %v3497_v4  ;;  %v3350_v15 = vunpack.c.l.bf16 %v3497_v4  ;;  %v3323_v8 = vunpack.c.h.bf16 %v3490_v46 }
 0x350   :  { %2047 = vmatpush.msrb.mxu3 %v3378_v55 }
 0x351   :  { %2011 = vmatpush.msrb.mxu0 %v3306_v9  ;;  %2024 = vmatpush.msrb.mxu2 %v3351_v12  ;;  %v3370_v9 = vunpack.c.l.bf16 %v3502_v3  ;;  %v3322_v12 = vunpack.c.l.bf16 %v3490_v46 }
 0x352   :  { %2048 = vmatpush.msrb.mxu3 %v3375_v60  ;;  %v3511_v60 = vld [vmem:[%s5241_s13 + $0xe8] sm:$0xff]  }
 0x353   :  { %2012 = vmatpush.msrb.mxu0 %v3303_v45  ;;  %2025 = vmatpush.msrb.mxu2 %v3350_v15  ;;  %v3501_v45 = vld [vmem:[%s5241_s13 + $0x98] sm:$0xff]   ;;  %v3407_v11 = vunpack.c.h.bf16 %v3511_v60 }
 0x354   :  { %2049 = vmatpush.msrb.mxu3 %v3374_v2  ;;  %v3367_v13 = vunpack.c.h.bf16 %v3501_v45 }
 0x355   :  { %2013 = vmatpush.msrb.mxu0 %v3302_v10  ;;  %2026 = vmatpush.msrb.mxu2 %v3347_v17  ;;  %v3366_v17 = vunpack.c.l.bf16 %v3501_v45 }
 0x356   :  { %2050 = vmatpush.msrb.mxu3 %v3371_v7 }
 0x357   :  { %2014 = vmatpush.msrb.mxu0 %v3299_v14  ;;  %2027 = vmatpush.msrb.mxu2 %v3346_v20 }
 0x358   :  { %2051 = vmatpush.msrb.mxu3 %v3370_v9 }
 0x359   :  { %2015 = vmatpush.msrb.mxu0 %v3298_v25  ;;  %2028 = vmatpush.msrb.mxu2 %v3343_v24 }
 0x35a   :  { %v1618_v51 = vpop.f32.mrf.mxu1  ;;  %2052 = vmatpush.msrb.mxu3 %v3367_v13 }
 0x35b   :  { %v1631_v22 = vpop.f32.mrf.mxu0  ;;  %2016 = vmatpush.msrb.mxu0 %v3295_v19  ;;  %2029 = vmatpush.msrb.mxu2 %v3342_v29 }
 0x35c   :  { %2053 = vmatpush.msrb.mxu3 %v3366_v17  ;;  %v3509_v17 = vld [vmem:[%s5241_s13 + $0xd8] sm:$0xff]  }
 0x35d   :  { %2017 = vmatpush.msrb.mxu0 %v3294_v23  ;;  %2030 = vmatpush.msrb.mxu2 %v3339_v32  ;;  %v828_v23 = vperm.slane %v4929_v33, 1  ;;  %v3359_v32 = vunpack.c.h.bf16 %v3499_v30  ;;  %v3508_v30 = vld [vmem:[%s5241_s13 + $0xd0] sm:$0xff]  }
 0x35f   :  { %2018 = vmatpush.msrb.mxu0 %v3291_v27  ;;  %2031 = vmatpush.msrb.mxu2 %v3338_v35  ;;  %v3513_v35 = vld [vmem:[%s5241_s13 + $0xf8] sm:$0xff]  }
 0x361   :  { %2019 = vmatpush.msrb.mxu0 %v3290_v31  ;;  %2032 = vmatpush.msrb.mxu2 %v3335_v42 }
 0x362   :  { %v1620_v37 = vpop.f32.mrf.mxu1 }
 0x363   :  { %v1633_v39 = vpop.f32.mrf.mxu0  ;;  %2033 = vmatpush.msrb.mxu2 %v3334_v44  ;;  %v3414_v44 = vunpack.c.l.bf16 %v3513_v35 }
 0x365   :  { %2034 = vmatpush.msrb.mxu2 %v3331_v54  ;;  %v3512_v54 = vld [vmem:[%s5241_s13 + $0xf0] sm:$0xff]  }
 0x366   :  { %v1605_v50 = vpop.f32.mrf.mxu3 }
 0x367   :  { %v1606_v53 = vadd.f32 %v1605_v50, %v827_v40  ;;  %2035 = vmatpush.msrb.mxu2 %v3330_v59  ;;  %v3415_v40 = vunpack.c.h.bf16 %v3513_v35  ;;  %v3410_v59 = vunpack.c.l.bf16 %v3512_v54 }
 0x369   :  { %v1619_v57 = vadd.f32 %v1618_v51, %v1606_v53  ;;  %v1644_v58 = vpop.f32.mrf.mxu2  ;;  %2036 = vmatpush.msrb.mxu2 %v3327_v1  ;;  %v3363_v51 = vunpack.c.h.bf16 %v3500_v18  ;;  %2064 = vmatpush.msrb.mxu1 %v3415_v40 }
 0x36a   :  { %v4947_v62 = vpop.f32.mrf.mxu1 }
 0x36b   :  { %v1632_v63 = vadd.f32 %v1631_v22, %v1619_v57  ;;  %v4952_v0 = vpop.f32.mrf.mxu0  ;;  %2037 = vmatpush.msrb.mxu2 %v3326_v6  ;;  %2054 = vmatpush.msrb.mxu3 %v3363_v51  ;;  %v3411_v57 = vunpack.c.h.bf16 %v3512_v54  ;;  %v3399_v51 = vunpack.c.h.bf16 %v3509_v17 }
 0x36c   :  { %2065 = vmatpush.msrb.mxu1 %v3414_v44  ;;  %v3519_v44 = vld [vmem:[%s5241_s13 + $0x128] sm:$0xff]  }
 0x36d   :  { %v4957_v5 = vadd.f32 %v1644_v58, %v1632_v63  ;;  %2038 = vmatpush.msrb.mxu2 %v3323_v8  ;;  %2055 = vmatpush.msrb.mxu3 %v3362_v26  ;;  %v3520_v26 = vld [vmem:[%s5241_s13 + $0x130] sm:$0xff]  }
 0x36e   :  { %v1607_v41 = vpop.f32.mrf.mxu3  ;;  %2066 = vmatpush.msrb.mxu1 %v3411_v57 }
 0x36f   :  { %v1908_v61 = vsel %vm123_vm1, %v4957_v5, 0.0  ;;  %v1950_v28 = vmul.f32 %v4957_v5, %v4957_v5  ;;  %2039 = vmatpush.msrb.mxu2 %v3322_v12  ;;  %2056 = vmatpush.msrb.mxu3 %v3359_v32 }
 0x370   :  { %v1909_v49 = vrot.slane %v1908_v61, 4  ;;  %2067 = vmatpush.msrb.mxu1 %v3410_v59 }
 0x371   :  { %v1956_v4 = vsel %vm123_vm1, %v1950_v28, 0.0  ;;  %v1646_v10 = vpop.f32.mrf.mxu2  ;;  %2057 = vmatpush.msrb.mxu3 %v3358_v34  ;;  %v3510_v28 = vld [vmem:[%s5241_s13 + $0xe0] sm:$0xff]   ;;  %v3395_v34 = vunpack.c.h.bf16 %v3508_v30 }
 0x372   :  { %v1910_v14 = vadd.f32 %v1909_v49, %v1908_v61  ;;  %v1957_v15 = vrot.slane %v1956_v4, 4  ;;  %v1685_v16 = vpop.f32.mrf.mxu1  ;;  %2068 = vmatpush.msrb.mxu1 %v3407_v11  ;;  %v3406_v61 = vunpack.c.l.bf16 %v3511_v60  ;;  %v3403_v49 = vunpack.c.h.bf16 %v3510_v28 }
 0x373   :  { %v1698_v25 = vpop.f32.mrf.mxu0  ;;  %2058 = vmatpush.msrb.mxu3 %v3355_v43  ;;  %v3394_v43 = vunpack.c.l.bf16 %v3508_v30 }
 0x374   :  { %v1911_v19 = vrot.slane %v1910_v14, 2  ;;  %v1958_v20 = vadd.f32 %v1957_v15, %v1956_v4  ;;  %2069 = vmatpush.msrb.mxu1 %v3406_v61  ;;  %v3521_v15 = vld [vmem:[%s5241_s13 + $0x138] sm:$0xff]  }
 0x375   :  { %2059 = vmatpush.msrb.mxu3 %v3354_v56  ;;  %v3447_v25 = vunpack.c.h.bf16 %v3521_v15  ;;  %v3438_v56 = vunpack.c.l.bf16 %v3519_v44 }
 0x376   :  { %v1912_v21 = vadd.f32 %v1911_v19, %v1910_v14  ;;  %v1959_v22 = vrot.slane %v1958_v20, 2  ;;  %2070 = vmatpush.msrb.mxu1 %v3403_v49  ;;  %v3402_v14 = vunpack.c.l.bf16 %v3510_v28  ;;  %v3517_v28 = vld [vmem:[%s5241_s13 + $0x118] sm:$0xff]  }
 0x377   :  { %v1670_v24 = vpop.f32.mrf.mxu3  ;;  %2084 = vmatpush.msra.mxu0 %v3447_v25  ;;  %v3430_v49 = vunpack.c.l.bf16 %v3517_v28 }
 0x378   :  { %v1913_v27 = vrot.slane %v1912_v21, 1  ;;  %v1960_v29 = vadd.f32 %v1959_v22, %v1958_v20  ;;  %2071 = vmatpush.msrb.mxu1 %v3402_v14  ;;  %v3446_v22 = vunpack.c.l.bf16 %v3521_v15  ;;  %v830_v14 = vperm.slane %v4929_v33, 3 }
 0x379   :  { %v1657_v31 = vpop.f32.mrf.mxu2 }
 0x37a   :  { %v1658_v37 = vadd.f32 %v1657_v31, %v828_v23  ;;  %v4983_v38 = vpop.f32.mrf.mxu1  ;;  %v1961_v39 = vrot.slane %v1960_v29, 1  ;;  %v1914_v48 = vadd.f32 %v1913_v27, %v1912_v21  ;;  %2072 = vmatpush.msrb.mxu1 %v3399_v51  ;;  %2085 = vmatpush.msra.mxu0 %v3446_v22  ;;  %v3515_v51 = vld [vmem:[%s5241_s13 + $0x108] sm:$0xff]   ;;  %v3528_v22 = vld [vmem:[%s5241_s13 + $0x170] sm:$0xff]  }
 0x37b   :  { %v1709_v42 = vpop.f32.mrf.mxu0  ;;  %v3474_v30 = vunpack.c.l.bf16 %v3528_v22 }
 0x37c   :  { %v1671_v47 = vadd.f32 %v1670_v24, %v1658_v37  ;;  %v1962_v50 = vadd.f32 %v1961_v39, %v1960_v29  ;;  %v3398_v24 = vunpack.c.l.bf16 %v3509_v17  ;;  %v3443_v29 = vunpack.c.h.bf16 %v3520_v26 }
 0x37e   :  { %v1684_v52 = vadd.f32 %v4947_v62, %v1671_v47  ;;  %v1998_v53 = vsel %vm156_vm4, %v1914_v48, %v1962_v50  ;;  %2073 = vmatpush.msrb.mxu1 %v3398_v24  ;;  %2086 = vmatpush.msra.mxu0 %v3443_v29  ;;  %v3507_v47 = vld [vmem:[%s5241_s13 + $0xc8] sm:$0xff]   ;;  %v3439_v50 = vunpack.c.h.bf16 %v3519_v44  ;;  %v3475_v24 = vunpack.c.h.bf16 %v3528_v22 }
 0x37f   :  { %v1672_v55 = vpop.f32.mrf.mxu3  ;;  %2020 = vmatmul.f32.vlgmr.msrb.gmra.mxu0 %v1998_v53  ;;  %v3390_v60 = vunpack.c.l.bf16 %v3507_v47 }
 0x380   :  { %v4991_v58 = vadd.f32 %v4952_v0, %v1684_v52  ;;  %v829_v0 = vperm.slane %v4929_v33, 2  ;;  %2074 = vmatpush.msrb.mxu1 %v3395_v34  ;;  %v3391_v52 = vunpack.c.h.bf16 %v3507_v47 }
 0x381   :  { %v1659_v62 = vpop.f32.mrf.mxu2 }
 0x382   :  { %v1915_v63 = vsel %vm123_vm1, %v4991_v58, 0.0  ;;  %v1951_v1 = vmul.f32 %v4991_v58, %v4991_v58  ;;  %v1750_v2 = vpop.f32.mrf.mxu1  ;;  %v1710_v45 = vadd.f32 %v1709_v42, %v829_v0  ;;  %2075 = vmatpush.msrb.mxu1 %v3394_v43  ;;  %v3518_v62 = vld [vmem:[%s5241_s13 + $0x120] sm:$0xff]  }
 0x383   :  { %v1916_v3 = vrot.slane %v1915_v63, 4  ;;  %v1711_v6 = vpop.f32.mrf.mxu0  ;;  %v3435_v11 = vunpack.c.h.bf16 %v3518_v62  ;;  %v3526_v43 = vld [vmem:[%s5241_s13 + $0x160] sm:$0xff]  }
 0x384   :  { %v1963_v7 = vsel %vm123_vm1, %v1951_v1, 0.0  ;;  %2076 = vmatpush.msrb.mxu1 %v3391_v52 }
 0x385   :  { %v1917_v41 = vadd.f32 %v1916_v3, %v1915_v63  ;;  %v1964_v46 = vrot.slane %v1963_v7, 4  ;;  %v3506_v63 = vld [vmem:[%s5241_s13 + $0xc0] sm:$0xff]  }
 0x386   :  { %2077 = vmatpush.msrb.mxu1 %v3390_v60  ;;  %v3387_v3 = vunpack.c.h.bf16 %v3506_v63  ;;  %v3386_v61 = vunpack.c.l.bf16 %v3506_v63 }
 0x387   :  { %v1918_v8 = vrot.slane %v1917_v41, 2  ;;  %v1965_v9 = vadd.f32 %v1964_v46, %v1963_v7  ;;  %v1735_v4 = vpop.f32.mrf.mxu3  ;;  %v3434_v7 = vunpack.c.l.bf16 %v3518_v62 }
 0x388   :  { %2078 = vmatpush.msrb.mxu1 %v3387_v3 }
 0x389   :  { %v1722_v10 = vpop.f32.mrf.mxu2  ;;  %v1919_v12 = vadd.f32 %v1918_v8, %v1917_v41  ;;  %v1966_v13 = vrot.slane %v1965_v9, 2  ;;  %v3431_v8 = vunpack.c.h.bf16 %v3517_v28 }
 0x38a   :  { %v1723_v16 = vadd.f32 %v1722_v10, %v1710_v45  ;;  %v5011_v18 = vpop.f32.mrf.mxu1  ;;  %2079 = vmatpush.msrb.mxu1 %v3386_v61  ;;  %v3516_v10 = vld [vmem:[%s5241_s13 + $0x110] sm:$0xff]  }
 0x38b   :  { %v1920_v19 = vrot.slane %v1919_v12, 1  ;;  %v1967_v20 = vadd.f32 %v1966_v13, %v1965_v9  ;;  %v3529_v13 = vld [vmem:[%s5241_s13 + $0x178] sm:$0xff]  }
 0x38c   :  { %v1736_v21 = vadd.f32 %v1735_v4, %v1723_v16  ;;  %v3479_v16 = vunpack.c.h.bf16 %v3529_v13 }
 0x38d   :  { %v1968_v23 = vrot.slane %v1967_v20, 1  ;;  %v1921_v31 = vadd.f32 %v1920_v19, %v1919_v12  ;;  %v3427_v12 = vunpack.c.h.bf16 %v3516_v10  ;;  %v3426_v19 = vunpack.c.l.bf16 %v3516_v10 }
 0x38e   :  { %v5017_v27 = vadd.f32 %v4983_v38, %v1736_v21  ;;  %v3442_v38 = vunpack.c.l.bf16 %v3520_v26  ;;  %2104 = vmatpush.msra.mxu2 %v3479_v16  ;;  %v3423_v21 = vunpack.c.h.bf16 %v3515_v51  ;;  %v3422_v26 = vunpack.c.l.bf16 %v3515_v51 }
 0x38f   :  { %v1969_v32 = vadd.f32 %v1968_v23, %v1967_v20  ;;  %v1737_v37 = vpop.f32.mrf.mxu3  ;;  %v3478_v20 = vunpack.c.l.bf16 %v3529_v13  ;;  %v1762_v23 = vadd.f32 %v5011_v18, %v830_v14 }
 0x390   :  { %v1922_v35 = vsel %vm123_vm1, %v5017_v27, 0.0  ;;  %v1952_v36 = vmul.f32 %v5017_v27, %v5017_v27  ;;  %2087 = vmatpush.msra.mxu0 %v3442_v38 }
 0x391   :  { %v1923_v39 = vrot.slane %v1922_v35, 4  ;;  %v1724_v40 = vpop.f32.mrf.mxu2  ;;  %v1999_v42 = vsel %vm156_vm4, %v1921_v31, %v1969_v32  ;;  %2105 = vmatpush.msra.mxu2 %v3478_v20  ;;  %v3514_v31 = vld [vmem:[%s5241_s13 + $0x100] sm:$0xff]  }
 0x392   :  { %v1970_v48 = vsel %vm123_vm1, %v1952_v36, 0.0  ;;  %2040 = vmatmul.f32.vlgmr.msrb.gmra.mxu2 %v1999_v42  ;;  %v1763_v55 = vpop.f32.mrf.mxu1  ;;  %2088 = vmatpush.msra.mxu0 %v3439_v50  ;;  %v3419_v34 = vunpack.c.h.bf16 %v3514_v31  ;;  %v3418_v38 = vunpack.c.l.bf16 %v3514_v31 }
 0x393   :  { %v1924_v53 = vadd.f32 %v1923_v39, %v1922_v35  ;;  %v1971_v54 = vrot.slane %v1970_v48, 4  ;;  %2106 = vmatpush.msra.mxu2 %v3475_v24  ;;  %v3527_v35 = vld [vmem:[%s5241_s13 + $0x168] sm:$0xff]  }
 0x394   :  { %2089 = vmatpush.msra.mxu0 %v3438_v56  ;;  %v3471_v18 = vunpack.c.h.bf16 %v3527_v35  ;;  %v3470_v42 = vunpack.c.l.bf16 %v3527_v35 }
 0x395   :  { %v1925_v57 = vrot.slane %v1924_v53, 2  ;;  %v1972_v59 = vadd.f32 %v1971_v54, %v1970_v48  ;;  %2107 = vmatpush.msra.mxu2 %v3474_v30  ;;  %v3467_v48 = vunpack.c.h.bf16 %v3526_v43  ;;  %v3466_v54 = vunpack.c.l.bf16 %v3526_v43 }
 0x396   :  { %2090 = vmatpush.msra.mxu0 %v3435_v11 }
 0x397   :  { %v1926_v1 = vadd.f32 %v1925_v57, %v1924_v53  ;;  %v1973_v2 = vrot.slane %v1972_v59, 2  ;;  %v1800_v0 = vpop.f32.mrf.mxu3  ;;  %2108 = vmatpush.msra.mxu2 %v3471_v18  ;;  %v831_v53 = vperm.slane %v4929_v33, 4 }
 0x398   :  { %2091 = vmatpush.msra.mxu0 %v3434_v7 }
 0x399   :  { %v1927_v41 = vrot.slane %v1926_v1, 1  ;;  %v1974_v46 = vadd.f32 %v1973_v2, %v1972_v59  ;;  %2109 = vmatpush.msra.mxu2 %v3470_v42  ;;  %v3525_v59 = vld [vmem:[%s5241_s13 + $0x158] sm:$0xff]  }
 0x39a   :  { %2092 = vmatpush.msra.mxu0 %v3431_v8  ;;  %v3463_v60 = vunpack.c.h.bf16 %v3525_v59  ;;  %v3462_v3 = vunpack.c.l.bf16 %v3525_v59 }
 0x39b   :  { %v1774_v6 = vpop.f32.mrf.mxu0  ;;  %v1975_v9 = vrot.slane %v1974_v46, 1  ;;  %v1928_v45 = vadd.f32 %v1927_v41, %v1926_v1  ;;  %2110 = vmatpush.msra.mxu2 %v3467_v48 }
 0x39c   :  { %2093 = vmatpush.msra.mxu0 %v3430_v49  ;;  %v1775_v29 = vadd.f32 %v1774_v6, %v1762_v23  ;;  %v3524_v6 = vld [vmem:[%s5241_s13 + $0x150] sm:$0xff]  }
 0x39d   :  { %v1976_v4 = vadd.f32 %v1975_v9, %v1974_v46  ;;  %2111 = vmatpush.msra.mxu2 %v3466_v54  ;;  %v3459_v41 = vunpack.c.h.bf16 %v3524_v6  ;;  %v3523_v46 = vld [vmem:[%s5241_s13 + $0x148] sm:$0xff]   ;;  %v3458_v61 = vunpack.c.l.bf16 %v3524_v6 }
 0x39e   :  { %2094 = vmatpush.msra.mxu0 %v3427_v12  ;;  %v3455_v49 = vunpack.c.h.bf16 %v3523_v46  ;;  %v3522_v12 = vld [vmem:[%s5241_s13 + $0x140] sm:$0xff]   ;;  %v3454_v14 = vunpack.c.l.bf16 %v3523_v46 }
 0x39f   :  { %v2000_v15 = vsel %vm156_vm4, %v1928_v45, %v1976_v4  ;;  %v1802_v17 = vpop.f32.mrf.mxu3  ;;  %2112 = vmatpush.msra.mxu2 %v3463_v60 }
 0x3a0   :  { %2060 = vmatmul.f32.vlgmr.msrb.gmra.mxu3 %v2000_v15  ;;  %2095 = vmatpush.msra.mxu0 %v3426_v19  ;;  %v3451_v17 = vunpack.c.h.bf16 %v3522_v12 }
 0x3a1   :  { %2113 = vmatpush.msra.mxu2 %v3462_v3 }
 0x3a2   :  { %2096 = vmatpush.msra.mxu0 %v3423_v21  ;;  %v3450_v21 = vunpack.c.l.bf16 %v3522_v12 }
 0x3a3   :  { %v1776_v25 = vpop.f32.mrf.mxu0  ;;  %2114 = vmatpush.msra.mxu2 %v3459_v41 }
 0x3a4   :  { %2097 = vmatpush.msra.mxu0 %v3422_v26 }
 0x3a5   :  { %2115 = vmatpush.msra.mxu2 %v3458_v61 }
 0x3a6   :  { %2098 = vmatpush.msra.mxu0 %v3419_v34 }
 0x3a7   :  { %2116 = vmatpush.msra.mxu2 %v3455_v49  ;;  %v815_v49 = vld [vmem:[%s5243_s14] sm:$0xff] }
 0x3a8   :  { %2099 = vmatpush.msra.mxu0 %v3418_v38  ;;  %v818_v12 = vunpack.c.h.bf16 %v815_v49 }
 0x3a9   :  { %v1787_v32 = vpop.f32.mrf.mxu2  ;;  %2117 = vmatpush.msra.mxu2 %v3454_v14 }
 0x3aa   :  { %v1788_v36 = vadd.f32 %v1787_v32, %v1775_v29  ;;  %v1826_v40 = vpop.f32.mrf.mxu1  ;;  %2129 = vst [vmem:[#allocation1 + $0x10] ss:$2 sm:$0xff] %v818_v12 }
 0x3ab   :  { %v1813_v37 = vpop.f32.mrf.mxu3  ;;  %2118 = vmatpush.msra.mxu2 %v3451_v17 }
 0x3ac   :  { %v5064_v39 = vadd.f32 %v1800_v0, %v1788_v36  ;;  %v1814_v1 = vadd.f32 %v1813_v37, %v831_v53  ;;  %v832_v36 = vperm.slane %v4929_v33, 5 }
 0x3ad   :  { %2119 = vmatpush.msra.mxu2 %v3450_v21 }
 0x3ae   :  { %v1929_v44 = vsel %vm123_vm1, %v5064_v39, 0.0  ;;  %v1953_v47 = vmul.f32 %v5064_v39, %v5064_v39  ;;  %v1827_v9 = vadd.f32 %v1826_v40, %v1814_v1 }
 0x3af   :  { %v1930_v50 = vrot.slane %v1929_v44, 4 }
 0x3b0   :  { %v1977_v52 = vsel %vm123_vm1, %v1953_v47, 0.0 }
 0x3b1   :  { %v1931_v55 = vadd.f32 %v1930_v50, %v1929_v44  ;;  %v1978_v56 = vrot.slane %v1977_v52, 4  ;;  %v1789_v57 = vpop.f32.mrf.mxu2 }
 0x3b2   :  { %v1828_v2 = vpop.f32.mrf.mxu1 }
 0x3b3   :  { %v1932_v62 = vrot.slane %v1931_v55, 2  ;;  %v1979_v11 = vadd.f32 %v1978_v56, %v1977_v52  ;;  %v1815_v63 = vpop.f32.mrf.mxu3 }
 0x3b5   :  { %v1933_v0 = vadd.f32 %v1932_v62, %v1931_v55  ;;  %v1980_v7 = vrot.slane %v1979_v11, 2 }
 0x3b7   :  { %v1934_v28 = vrot.slane %v1933_v0, 1  ;;  %v1981_v8 = vadd.f32 %v1980_v7, %v1979_v11 }
 0x3b9   :  { %v1852_v4 = vpop.f32.mrf.mxu2  ;;  %v1982_v10 = vrot.slane %v1981_v8, 1  ;;  %v1935_v15 = vadd.f32 %v1934_v28, %v1933_v0 }
 0x3bb   :  { %v1839_v45 = vpop.f32.mrf.mxu0  ;;  %v1983_v16 = vadd.f32 %v1982_v10, %v1981_v8 }
 0x3bc   :  { %v1840_v13 = vadd.f32 %v1839_v45, %v1827_v9  ;;  %v817_v45 = vunpack.c.l.bf16 %v815_v49 }
 0x3bd   :  { %v2001_v19 = vsel %vm156_vm4, %v1935_v15, %v1983_v16  ;;  %v2134_v15 = vld.sshfl [vmem:[#allocation1 + $0x10] sm:$0xff pattern:$0x75316420]  ;;  %v2135_v16 = vld.sshfl [vmem:[#allocation1 + $0x18] sm:$0xff pattern:$0x75316420] }
 0x3be   :  { %v5087_v25 = vadd.f32 %v1852_v4, %v1840_v13  ;;  %2080 = vmatmul.f32.vlgmr.msrb.gmra.mxu1 %v2001_v19  ;;  %2127 = vst [vmem:[#allocation1] ss:$2 sm:$0xff] %v817_v45  ;;  %v816_v13 = vld [vmem:[%s5243_s14 + $0x8] sm:$0xf] }
 0x3bf   :  { %v819_v14 = vunpack.c.l.bf16 %v816_v13 }
 0x3c0   :  { %v1936_v20 = vsel %vm123_vm1, %v5087_v25, 0.0  ;;  %v1954_v51 = vmul.f32 %v5087_v25, %v5087_v25 }
 0x3c1   :  { %v1937_v22 = vrot.slane %v1936_v20, 4  ;;  %v1854_v30 = vpop.f32.mrf.mxu2  ;;  %2131 = vst [vmem:[#allocation1 + $0x20] ss:$2 sm:$0xff] %v819_v14 }
 0x3c2   :  { %v1984_v23 = vsel %vm123_vm1, %v1954_v51, 0.0 }
 0x3c3   :  { %v1938_v24 = vadd.f32 %v1937_v22, %v1936_v20  ;;  %v1985_v26 = vrot.slane %v1984_v23, 4  ;;  %v1841_v29 = vpop.f32.mrf.mxu0 }
 0x3c5   :  { %v1939_v31 = vrot.slane %v1938_v24, 2  ;;  %v1986_v32 = vadd.f32 %v1985_v26, %v1984_v23  ;;  %v2132_v4 = vld.sshfl [vmem:[#allocation1] sm:$0xff pattern:$0x75316420] }
 0x3c6   :  { %v2133_v10 = vld.sshfl [vmem:[#allocation1 + $0x8] sm:$0xff pattern:$0x75316420]  ;;  %3116 = vmatpush.msk.msra.mxu3 %vm2142_vm3, %v2132_v4 }
 0x3c7   :  { %v1940_v34 = vadd.f32 %v1939_v31, %v1938_v24  ;;  %v1987_v35 = vrot.slane %v1986_v32, 2  ;;  %3118 = vmatpush.msk.msra.mxu1 %vm2142_vm3, %v2133_v10 }
 0x3c8   :  { %3120 = vmatpush.msk.msrb.mxu3 %vm2142_vm3, %v2134_v15  ;;  %v2136_v31 = vld.sshfl [vmem:[#allocation1 + $0x20] sm:$0xff pattern:$0x75316420] }
 0x3c9   :  { %v1941_v18 = vrot.slane %v1940_v34, 1  ;;  %v1988_v37 = vadd.f32 %v1987_v35, %v1986_v32  ;;  %3122 = vmatpush.msk.msrb.mxu1 %vm2142_vm3, %v2135_v16  ;;  %v2137_v32 = vld.sshfl [vmem:[#allocation1 + $0x28] sm:$0xff pattern:$0x75316420] }
 0x3ca   :  { %v1891_v40 = vpop.f32.mrf.mxu1 }
 0x3cb   :  { %v1878_v38 = vpop.f32.mrf.mxu3  ;;  %v1904_v42 = vpop.f32.mrf.mxu0  ;;  %v1989_v43 = vrot.slane %v1988_v37, 1  ;;  %v1942_v48 = vadd.f32 %v1941_v18, %v1940_v34 }
 0x3cd   :  { %v1865_v44 = vpop.f32.mrf.mxu2  ;;  %v1990_v50 = vadd.f32 %v1989_v43, %v1988_v37 }
 0x3ce   :  { %v1866_v47 = vadd.f32 %v1865_v44, %v832_v36 }
 0x3cf   :  { %v2002_v53 = vsel %vm156_vm4, %v1942_v48, %v1990_v50 }
 0x3d0   :  { %v1879_v52 = vadd.f32 %v1878_v38, %v1866_v47  ;;  %2100 = vmatmul.f32.vlgmr.msra.gmra.mxu0 %v2002_v53 }
 0x3d2   :  { %v1892_v54 = vadd.f32 %v1891_v40, %v1879_v52  ;;  %v1893_v57 = vpop.f32.mrf.mxu1 }
 0x3d3   :  { %v1880_v55 = vpop.f32.mrf.mxu3  ;;  %v1906_v33 = vpop.f32.mrf.mxu0 }
 0x3d4   :  { %v5097_v56 = vadd.f32 %v1904_v42, %v1892_v54 }
 0x3d5   :  { %v1867_v59 = vpop.f32.mrf.mxu2 }
 0x3d6   :  { %v1943_v60 = vsel %vm123_vm1, %v5097_v56, 0.0  ;;  %v1955_v62 = vmul.f32 %v5097_v56, %v5097_v56 }
 0x3d7   :  { %v1944_v11 = vrot.slane %v1943_v60, 4 }
 0x3d8   :  { %v1991_v63 = vsel %vm123_vm1, %v1955_v62, 0.0 }
 0x3d9   :  { %v1945_v1 = vadd.f32 %v1944_v11, %v1943_v60  ;;  %v1992_v2 = vrot.slane %v1991_v63, 4 }
 0x3db   :  { %v1946_v3 = vrot.slane %v1945_v1, 2  ;;  %v1993_v6 = vadd.f32 %v1992_v2, %v1991_v63 }
 0x3dd   :  { %v1947_v0 = vadd.f32 %v1946_v3, %v1945_v1  ;;  %v1994_v7 = vrot.slane %v1993_v6, 2 }
 0x3df   :  { %v1948_v41 = vrot.slane %v1947_v0, 1  ;;  %v1995_v46 = vadd.f32 %v1994_v7, %v1993_v6 }
 0x3e1   :  { %v1996_v61 = vrot.slane %v1995_v46, 1  ;;  %v1949_v28 = vadd.f32 %v1948_v41, %v1947_v0 }
 0x3e3   :  { %v1997_v8 = vadd.f32 %v1996_v61, %v1995_v46 }
 0x3e5   :  { %v2003_v9 = vsel %vm156_vm4, %v1949_v28, %v1997_v8  ;;  %vm2138_vm4 = vcmask 23552  }
 0x3e6   :  { %2120 = vmatmul.f32.vlgmr.msra.gmra.mxu2 %v2003_v9 }
 0x3fc   :  { %v2021_v17 = vpop.f32.mrf.mxu0 }
 0x415   :  { %v2041_v19 = vpop.f32.mrf.mxu2 }
 0x416   :  { %v2042_v51 = vadd.f32 %v2041_v19, %v2021_v17 }
 0x423   :  { %v2061_v20 = vpop.f32.mrf.mxu3 }
 0x424   :  { %v2062_v22 = vadd.f32 %v2061_v20, %v2042_v51  ;;  %v5161_v51 = vld [vmem:[%s5244_s15] sm:$0x3f] }
 0x43b   :  { %v2081_v21 = vpop.f32.mrf.mxu1 }
 0x43c   :  { %v2082_v24 = vadd.f32 %v2081_v21, %v2062_v22 }
 0x44d   :  { %v2101_v23 = vpop.f32.mrf.mxu0 }
 0x44e   :  { %v2102_v26 = vadd.f32 %v2101_v23, %v2082_v24 }
 0x469   :  { %v2121_v29 = vpop.f32.mrf.mxu2 }
 0x46a   :  { %v2122_v30 = vadd.f32 %v2121_v29, %v2102_v26 }
 0x46c   :  { %3117 = vmatmul.msk.f32.vlgmr.msra.gmra.mxu3 %vm2138_vm4, %v2122_v30  ;;  %3119 = vmatmul.msk.f32.vlgmr.msra.gmra.mxu1 %vm2138_vm4, %v2122_v30 }
 0x46d   :  { %3124 = vmatpush.msk.msra.mxu3 %vm2142_vm3, %v2136_v31  ;;  %3126 = vmatpush.msk.msra.mxu1 %vm2142_vm3, %v2137_v32 }
 0x474   :  { %3121 = vmatmul.msk.f32.vlgmr.msrb.gmra.mxu3 %vm2138_vm4, %v2122_v30  ;;  %3123 = vmatmul.msk.f32.vlgmr.msrb.gmra.mxu1 %vm2138_vm4, %v2122_v30 }
 0x47c   :  { %3125 = vmatmul.msk.f32.vlgmr.msra.gmra.mxu3 %vm2138_vm4, %v2122_v30  ;;  %3127 = vmatmul.msk.f32.vlgmr.msra.gmra.mxu1 %vm2138_vm4, %v2122_v30  ;;  %v2397_v30 = vperm.slane %v5161_v51, 1 }
 0x4e9   :  { %v2192_v34 = vpop.f32.mrf.mxu1 }
 0x4ea   :  { %v5117_v35 = vmul.f32 0.001953125, %v2192_v34 }
 0x4ec   :  { %v2282_v36 = vmul.f32 %v5117_v35, %v5117_v35  ;;  %v2318_v34 = vperm.slane %v5117_v35, 0 }
 0x4ee   :  { %v2294_v18 = vrot.slane %v2282_v36, 7 }
 0x4ef   :  { %v2172_v37 = vpop.f32.mrf.mxu3 }
 0x4f0   :  { %v2306_v38 = vsub.f32 %v5117_v35, %v2294_v18  ;;  %v5122_v40 = vmul.f32 0.001953125, %v2172_v37  ;;  %v5184_v35 = vld [vmem:[%s5245_s16] sm:$0x3f] }
 0x4f1   :  { %v2232_v42 = vpop.f32.mrf.mxu1 }
 0x4f2   :  { %v2312_v43 = vmax.f32 %v2306_v38, 0.0  ;;  %v2281_v44 = vmul.f32 %v5122_v40, %v5122_v40  ;;  %v5126_v47 = vmul.f32 0.001953125, %v2232_v42  ;;  %v2317_v18 = vperm.slane %v5122_v40, 0 }
 0x4f4   :  { %v2330_v48 = vadd.f32 1e-05, %v2312_v43  ;;  %v2293_v50 = vrot.slane %v2281_v44, 7  ;;  %v2284_v52 = vmul.f32 %v5126_v47, %v5126_v47 }
 0x4f6   :  { %3536 = vrsqrt.f32 %v2330_v48  ;;  %v2305_v53 = vsub.f32 %v5122_v40, %v2293_v50  ;;  %v2296_v54 = vrot.slane %v2284_v52, 7  ;;  %vm2351_vm6 = vweird.f32 %v2330_v48 }
 0x4f7   :  { %v2212_v55 = vpop.f32.mrf.mxu3  ;;  %v2396_v40 = vperm.slane %v5161_v51, 0 }
 0x4f8   :  { %v2311_v57 = vmax.f32 %v2305_v53, 0.0  ;;  %v5131_v33 = vmul.f32 0.001953125, %v2212_v55  ;;  %v2308_v59 = vsub.f32 %v5126_v47, %v2296_v54  ;;  %v2320_v54 = vperm.slane %v5126_v47, 0 }
 0x4f9   :  { %v2272_v60 = vpop.f32.mrf.mxu1  ;;  %v2399_v55 = vperm.slane %v5161_v51, 3  ;;  %v2430_v47 = vperm.slane %v5184_v35, 3 }
 0x4fa   :  { %v2329_v62 = vadd.f32 1e-05, %v2311_v57  ;;  %v2283_v11 = vmul.f32 %v5131_v33, %v5131_v33  ;;  %v2314_v63 = vmax.f32 %v2308_v59, 0.0  ;;  %v5136_v1 = vmul.f32 0.001953125, %v2272_v60 }
 0x4fc   :  { %v5138_v2 = vpop.eup %3536  ;;  %3538 = vrsqrt.f32 %v2329_v62  ;;  %v2295_v3 = vrot.slane %v2283_v11, 7  ;;  %v5141_v0 = vadd.f32 1e-05, %v2314_v63  ;;  %v2286_v7 = vmul.f32 %v5136_v1, %v5136_v1 }
 0x4fd   :  { %v2346_v6 = vmul.f32 %v5138_v2, %v2330_v48  ;;  %vm2352_vm5 = vweird.f32 %v5138_v2  ;;  %vm2341_vm9 = vweird.f32 %v2329_v62  ;;  %v2324_v11 = vsub.f32 %v4991_v58, %v2318_v34 }
 0x4fe   :  { %v2307_v41 = vsub.f32 %v5131_v33, %v2295_v3  ;;  %3540 = vrsqrt.f32 %v5141_v0  ;;  %v2298_v61 = vrot.slane %v2286_v7, 7  ;;  %vm5170_vm8 = vmor %vm2351_vm6, %vm2352_vm5  ;;  %vm2371_vm13 = vweird.f32 %v5141_v0 }
 0x4ff   :  { %v2347_v46 = vmul.f32 %v5138_v2, %v2346_v6  ;;  %v2252_v28 = vpop.f32.mrf.mxu3  ;;  %v2428_v63 = vperm.slane %v5184_v35, 1  ;;  %v2326_v58 = vsub.f32 %v5064_v39, %v2320_v54 }
 0x500   :  { %v2313_v8 = vmax.f32 %v2307_v41, 0.0  ;;  %v5148_v9 = vmul.f32 0.001953125, %v2252_v28  ;;  %v2310_v45 = vsub.f32 %v5136_v1, %v2298_v61 }
 0x501   :  { %v2348_v49 = vmul.f32 0.5, %v2347_v46 }
 0x502   :  { %v3539_v4 = vpop.eup %3538  ;;  %v5151_v10 = vadd.f32 1e-05, %v2313_v8  ;;  %v2285_v12 = vmul.f32 %v5148_v9, %v5148_v9  ;;  %v2316_v15 = vmax.f32 %v2310_v45, 0.0  ;;  %v2401_v45 = vperm.slane %v5161_v51, 5 }
 0x503   :  { %v2349_v13 = vsub.f32 1.5, %v2348_v49  ;;  %v2336_v14 = vmul.f32 %v3539_v4, %v2329_v62  ;;  %vm2342_vm7 = vweird.f32 %v3539_v4 }
 0x504   :  { %3542 = vrsqrt.f32 %v5151_v10  ;;  %v2297_v16 = vrot.slane %v2285_v12, 7  ;;  %v3541_v17 = vpop.eup %3540  ;;  %v5156_v20 = vadd.f32 1e-05, %v2316_v15  ;;  %vm5186_vm11 = vmor %vm2341_vm9, %vm2342_vm7  ;;  %vm2361_vm0 = vweird.f32 %v5151_v10 }
 0x505   :  { %v2337_v19 = vmul.f32 %v3539_v4, %v2336_v14  ;;  %v2366_v21 = vmul.f32 %v3541_v17, %v5141_v0  ;;  %v2350_v23 = vmul.f32 %v5138_v2, %v2349_v13  ;;  %vm2372_vm12 = vweird.f32 %v3541_v17 }
 0x506   :  { %v2309_v22 = vsub.f32 %v5148_v9, %v2297_v16  ;;  %3544 = vrsqrt.f32 %v5156_v20  ;;  %vm2373_vm14 = vmor %vm2371_vm13, %vm2372_vm12  ;;  %v2398_v0 = vperm.slane %v5161_v51, 2  ;;  %v2319_v14 = vperm.slane %v5131_v33, 0 }
 0x507   :  { %v2338_v24 = vmul.f32 0.5, %v2337_v19  ;;  %v2367_v26 = vmul.f32 %v3541_v17, %v2366_v21  ;;  %v2354_v42 = vsel %vm5170_vm8, %v5138_v2, %v2350_v23  ;;  %v2323_v2 = vsub.f32 %v4957_v5, %v2317_v18 }
 0x508   :  { %v2315_v29 = vmax.f32 %v2309_v22, 0.0  ;;  %v2409_v59 = vmul.f32 %v2397_v30, %v2354_v42  ;;  %vm2391_vm4 = vweird.f32 %v5156_v20  ;;  %vm2456_vm9 = vcmask 1045508  }
 0x509   :  { %v2339_v31 = vsub.f32 1.5, %v2338_v24  ;;  %v2368_v37 = vmul.f32 0.5, %v2367_v26  ;;  %v2429_v24 = vperm.slane %v5184_v35, 2 }
 0x50a   :  { %v3543_v32 = vpop.eup %3542  ;;  %v5175_v38 = vadd.f32 1e-05, %v2315_v29  ;;  %v2415_v8 = vperm.slane %v2409_v59, 1  ;;  %v2325_v29 = vsub.f32 %v5017_v27, %v2319_v14 }
 0x50b   :  { %v2340_v43 = vmul.f32 %v3539_v4, %v2339_v31  ;;  %v2356_v44 = vmul.f32 %v3543_v32, %v5151_v10  ;;  %v2369_v50 = vsub.f32 1.5, %v2368_v37  ;;  %vm2362_vm15 = vweird.f32 %v3543_v32 }
 0x50c   :  { %3546 = vrsqrt.f32 %v5175_v38  ;;  %v3545_v52 = vpop.eup %3544  ;;  %vm2363_vm2 = vmor %vm2361_vm0, %vm2362_vm15  ;;  %v2421_v19 = vmul.f32 %v2415_v8, %v2324_v11  ;;  %v2427_v10 = vperm.slane %v5184_v35, 0  ;;  %v2400_v37 = vperm.slane %v5161_v51, 4 }
 0x50d   :  { %v2344_v53 = vsel %vm5186_vm11, %v3539_v4, %v2340_v43  ;;  %v2357_v57 = vmul.f32 %v3543_v32, %v2356_v44  ;;  %v2370_v60 = vmul.f32 %v3541_v17, %v2369_v50  ;;  %v2386_v62 = vmul.f32 %v3545_v52, %v5156_v20 }
 0x50e   :  { %v2408_v6 = vmul.f32 %v2396_v40, %v2344_v53  ;;  %vm2392_vm3 = vweird.f32 %v3545_v52  ;;  %v2440_v34 = vadd.f32 %v2428_v63, %v2421_v19  ;;  %v2321_v43 = vperm.slane %v5148_v9, 0 }
 0x50f   :  { %v2358_v3 = vmul.f32 0.5, %v2357_v57  ;;  %v2374_v7 = vsel %vm2373_vm14, %v3541_v17, %v2370_v60  ;;  %v2387_v41 = vmul.f32 %v3545_v52, %v2386_v62  ;;  %v2322_v17 = vperm.slane %v5136_v1, 0  ;;  %vm2393_vm5 = vmor %vm2391_vm4, %vm2392_vm3 }
 0x510   :  { %v2411_v46 = vmul.f32 %v2399_v55, %v2374_v7  ;;  %v2414_v13 = vperm.slane %v2408_v6, 1  ;;  %vm2381_vm7 = vweird.f32 %v5175_v38  ;;  %v2432_v40 = vperm.slane %v5184_v35, 5 }
 0x511   :  { %v2359_v61 = vsub.f32 1.5, %v2358_v3  ;;  %v2388_v49 = vmul.f32 0.5, %v2387_v41  ;;  %v2328_v1 = vsub.f32 %v5097_v56, %v2322_v17  ;;  %v2327_v51 = vsub.f32 %v5087_v25, %v2321_v43 }
 0x512   :  { %v3547_v28 = vpop.eup %3546  ;;  %v2417_v5 = vperm.slane %v2411_v46, 1  ;;  %v2420_v33 = vmul.f32 %v2414_v13, %v2323_v2  ;;  %v2431_v57 = vperm.slane %v5184_v35, 4 }
 0x513   :  { %v2360_v4 = vmul.f32 %v3543_v32, %v2359_v61  ;;  %v2376_v12 = vmul.f32 %v3547_v28, %v5175_v38  ;;  %v2389_v15 = vsub.f32 1.5, %v2388_v49  ;;  %vm2382_vm6 = vweird.f32 %v3547_v28 }
 0x514   :  { %v2423_v21 = vmul.f32 %v2417_v5, %v2326_v58  ;;  %v2439_v48 = vadd.f32 %v2427_v10, %v2420_v33  ;;  %vm2383_vm8 = vmor %vm2381_vm7, %vm2382_vm6 }
 0x515   :  { %v2364_v16 = vsel %vm2363_vm2, %v3543_v32, %v2360_v4  ;;  %v2377_v39 = vmul.f32 %v3547_v28, %v2376_v12  ;;  %v2390_v23 = vmul.f32 %v3545_v52, %v2389_v15 }
 0x516   :  { %v2410_v22 = vmul.f32 %v2398_v0, %v2364_v16  ;;  %v2442_v36 = vadd.f32 %v2430_v47, %v2423_v21 }
 0x517   :  { %v2378_v26 = vmul.f32 0.5, %v2377_v39  ;;  %v2394_v31 = vsel %vm2393_vm5, %v3545_v52, %v2390_v23  ;;  %v2451_v52 = vrot.slane %v2440_v34, 6 }
 0x518   :  { %v2416_v30 = vperm.slane %v2410_v22, 1  ;;  %v2413_v32 = vmul.f32 %v2401_v45, %v2394_v31  ;;  %v2453_v53 = vrot.slane %v2442_v36, 2 }
 0x519   :  { %v2379_v20 = vsub.f32 1.5, %v2378_v26  ;;  %v2455_v9 = vsel %vm123_vm1, %v2439_v48, %v2451_v52 }
 0x51a   :  { %v2422_v18 = vmul.f32 %v2416_v30, %v2325_v29  ;;  %v2419_v42 = vperm.slane %v2413_v32, 1 }
 0x51b   :  { %v2380_v44 = vmul.f32 %v3547_v28, %v2379_v20 }
 0x51c   :  { %v2441_v27 = vadd.f32 %v2429_v24, %v2422_v18  ;;  %v2425_v56 = vmul.f32 %v2419_v42, %v2328_v1 }
 0x51d   :  { %v2384_v50 = vsel %vm2383_vm8, %v3547_v28, %v2380_v44 }
 0x51e   :  { %v2452_v54 = vrot.slane %v2441_v27, 4  ;;  %v2412_v55 = vmul.f32 %v2400_v37, %v2384_v50  ;;  %v2444_v38 = vadd.f32 %v2432_v40, %v2425_v56 }
 0x520   :  { %v2457_v59 = vsel %vm2456_vm9, %v2452_v54, %v2453_v53  ;;  %v2418_v60 = vperm.slane %v2412_v55, 1  ;;  %v2454_v63 = vrot.slane %v2444_v38, 6 }
 0x521   :  { %v2458_v62 = vsel %vm1577_vm10, %v2455_v9, %v2457_v59 }
 0x522   :  { %v2424_v11 = vmul.f32 %v2418_v60, %v2327_v51  ;;  %2462 = vst [vmem:[%s5246_s17] sm:$0xff] %v2458_v62 }
 0x524   :  { %v2443_v2 = vadd.f32 %v2431_v57, %v2424_v11 }
 0x526   :  { %v2459_v3 = vsel %vm123_vm1, %v2443_v2, %v2454_v63 }
 0x527   :  { %2463 = vst [vmem:[%s5246_s17 + $0x8] sm:$0xf] %v2459_v3 }

</bundles_post_ra>
